<compile_context>
chip_gen: v7x
topology: tpu7x:2x2x1
jax: 0.10.0
libtpu: 0.0.40
codegen_flags: <defaults>
</compile_context>

<pallas_src>
import math
import functools
from functools import partial

import jax
import jax.numpy as jnp
from jax import lax
from jax.experimental import pallas as pl
from jax.experimental.pallas import tpu as pltpu

LN_EPS = 1e-5   # PyTorch nn.LayerNorm default eps


# ---------------------------------------------------------------------------
# Per-chip configuration (VMEM limit / tile sizes) + single-buffer probe
# ---------------------------------------------------------------------------

@functools.lru_cache(maxsize=None)
def _chip_config():
    """Pick VMEM limit / tile sizes per TPU generation: v5e/v6e (128 MiB VMEM)
    get a ~96 MiB scoped limit and bigger row tiles; v7x (64 MiB) gets 48 MiB
    and a smaller FFN row tile."""
    try:
        cap = int(pltpu.get_tpu_info().vmem_capacity_bytes)
    except Exception:
        cap = 64 * 1024 * 1024            # conservative fallback (v7x-sized)
    big_vmem = cap >= 100 * 1024 * 1024
    return {
        "vmem_limit": int(cap * 3 // 4),            # 96 MiB v5e/v6e, 48 MiB v7x
        "row_tile": 1024 if big_vmem else 512,      # projection M-tile
        "ffn_row_tile": 512 if big_vmem else 256,   # FFN M-tile (w1+w2+f32 h)
        "attn_tile": 256,                           # Sq/Sk tile (keeps MXU full)
    }


@functools.lru_cache(maxsize=None)
def _single_buffer_ok():
    """Probe (AOT lower+compile, no execution) whether
    BlockSpec(pipeline_mode=pl.Buffered(1)) is supported by this build;
    constant-index weight blocks don't need double buffering."""
    def _probe(w_ref, x_ref, o_ref):
        o_ref[...] = x_ref[...] + w_ref[...]
    try:
        fn = pl.pallas_call(
            _probe,
            grid=(2,),
            in_specs=[
                pl.BlockSpec((8, 128), lambda i: (0, 0),
                             pipeline_mode=pl.Buffered(1)),
                pl.BlockSpec((8, 128), lambda i: (i, 0)),
            ],
            out_specs=pl.BlockSpec((8, 128), lambda i: (i, 0)),
            out_shape=jax.ShapeDtypeStruct((16, 128), jnp.float32),
        )
        jax.jit(fn).lower(jax.ShapeDtypeStruct((8, 128), jnp.float32),
                          jax.ShapeDtypeStruct((16, 128), jnp.float32)).compile()
        return True
    except Exception:
        return False


def _const_spec(block_shape, grid_rank):
    """BlockSpec for a grid-invariant operand (weight/bias/gamma/beta)."""
    zeros = (0,) * len(block_shape)
    if grid_rank == 1:
        idx = lambda i: zeros
    elif grid_rank == 3:
        idx = lambda b, qi, ki: zeros
    else:
        idx = lambda *args: zeros
    if _single_buffer_ok():
        return pl.BlockSpec(block_shape, idx, pipeline_mode=pl.Buffered(1))
    return pl.BlockSpec(block_shape, idx)


def _params(cfg, semantics):
    return pltpu.CompilerParams(dimension_semantics=semantics,
                                vmem_limit_bytes=cfg["vmem_limit"])


def _pick_tile(n, target):
    """`target` if it divides n, else the whole axis (keeps blocks aligned and
    avoids ragged Sk tiles corrupting the online softmax)."""
    return n if (n <= target or n % target != 0) else target


# ---------------------------------------------------------------------------
# Kernels
# ---------------------------------------------------------------------------

def _split_proj_kernel(x_ref, w_ref, b_ref, *o_refs):
    """y_i = x @ w[:, cols_i] + b[cols_i] for each column split (packed QKV).
    Each output uses its own dot against a static column slice of the weight,
    so no (tm, 3D) f32 temporary is ever materialized."""
    x = x_ref[...].astype(jnp.bfloat16)
    off = 0
    for o_ref in o_refs:
        n = o_ref.shape[-1]
        y = jnp.dot(x, w_ref[:, off:off + n],
                    preferred_element_type=jnp.float32) + b_ref[:, off:off + n]
        o_ref[...] = y.astype(o_ref.dtype)
        off += n


def _flash_attn_ln_kernel(nhead, q_ref, k_ref, v_ref, wo_ref, bo_ref,
                          res_ref, g_ref, beta_ref, o_ref,
                          m_sc, l_sc, acc_sc):
    """Flash-style MHA for one (batch, Sq-tile): online-softmax accumulation
    over the Sk grid axis; the last Sk step runs the fused epilogue
    LayerNorm(residual + ctx @ W_o + b_o).

    Heads are static column slices of the (tq, D)/(tk, D) blocks — no
    (B, H, S, hd) transposes exist anywhere in the pipeline.  The 1/sqrt(hd)
    scale is already folded into the Q projection weights."""
    ki = pl.program_id(2)
    D = q_ref.shape[-1]
    hd = D // nhead

    @pl.when(ki == 0)
    def _():
        m_sc[...] = jnp.full(m_sc.shape, -jnp.inf, m_sc.dtype)
        l_sc[...] = jnp.zeros(l_sc.shape, l_sc.dtype)
        acc_sc[...] = jnp.zeros(acc_sc.shape, acc_sc.dtype)

    q = q_ref[0]                    # (tq, D) bf16, pre-scaled
    k = k_ref[0]                    # (tk, D) bf16
    v = v_ref[0]                    # (tk, D) bf16
    for h in range(nhead):
        lo = h * hd
        # q_h @ k_h^T by contracting the hd axis (no materialized transpose)
        s = lax.dot_general(q[:, lo:lo + hd], k[:, lo:lo + hd],
                            (((1,), (1,)), ((), ())),
                            preferred_element_type=jnp.float32)   # (tq, tk)
        m_prev = m_sc[h]                                          # (tq, 1)
        m_new = jnp.maximum(m_prev, jnp.max(s, axis=-1, keepdims=True))
        alpha = jnp.exp(m_prev - m_new)
        p = jnp.exp(s - m_new)
        l_sc[h] = alpha * l_sc[h] + jnp.sum(p, axis=-1, keepdims=True)
        acc_sc[h] = alpha * acc_sc[h] + jnp.dot(
            p.astype(v.dtype), v[:, lo:lo + hd],
            preferred_element_type=jnp.float32)
        m_sc[h] = m_new

    @pl.when(ki == pl.num_programs(2) - 1)
    def _():
        # Per-head normalize + partial out-proj (ctx_h @ W_o[rows_h]) summed
        # into a single f32 accumulator — no concat / full-width bf16 temp.
        tq = q_ref.shape[1]
        y = jnp.zeros((tq, D), jnp.float32)
        for h in range(nhead):
            lo = h * hd
            inv_l = pl.reciprocal(l_sc[h], approx=True)
            ctx_h = (acc_sc[h] * inv_l).astype(jnp.bfloat16)
            y = y + jnp.dot(ctx_h, wo_ref[lo:lo + hd, :],
                            preferred_element_type=jnp.float32)
        z = res_ref[0] + y + bo_ref[...]
        mean = jnp.mean(z, axis=-1, keepdims=True)
        c = z - mean
        var = jnp.mean(c * c, axis=-1, keepdims=True)
        o_ref[0] = (c * lax.rsqrt(var + LN_EPS) * g_ref[...]
                    + beta_ref[...]).astype(o_ref.dtype)


def _ffn_add_ln_kernel(x_ref, w1_ref, b1_ref, w2_ref, b2_ref, g_ref, beta_ref,
                       o_ref):
    """LayerNorm(x + linear2(relu(linear1(x)))) fused in one kernel."""
    x = x_ref[...]                                  # f32 (residual precision)
    h = jnp.dot(x.astype(jnp.bfloat16), w1_ref[...],
                preferred_element_type=jnp.float32) + b1_ref[...]
    h = jnp.maximum(h, 0.0)                         # ReLU
    y = jnp.dot(h.astype(jnp.bfloat16), w2_ref[...],
                preferred_element_type=jnp.float32) + b2_ref[...]
    z = x + y
    mean = jnp.mean(z, axis=-1, keepdims=True)
    c = z - mean
    var = jnp.mean(c * c, axis=-1, keepdims=True)
    o_ref[...] = (c * lax.rsqrt(var + LN_EPS) * g_ref[...]
                  + beta_ref[...]).astype(o_ref.dtype)


# ---------------------------------------------------------------------------
# pallas_call wrappers
# ---------------------------------------------------------------------------

def fused_projection(x2d, w_t, b_row, out_widths, cfg):
    """x @ w_t + b, column-split into len(out_widths) bf16 outputs."""
    M, D = x2d.shape
    N = w_t.shape[1]
    tm = _pick_tile(M, cfg["row_tile"])
    return pl.pallas_call(
        _split_proj_kernel,
        grid=(pl.cdiv(M, tm),),
        in_specs=[
            pl.BlockSpec((tm, D), lambda i: (i, 0)),
            _const_spec((D, N), 1),
            _const_spec((1, N), 1),
        ],
        out_specs=tuple(pl.BlockSpec((tm, n), lambda i: (i, 0))
                        for n in out_widths),
        out_shape=tuple(jax.ShapeDtypeStruct((M, n), jnp.bfloat16)
                        for n in out_widths),
        compiler_params=_params(cfg, ("parallel",)),
    )(x2d, w_t, b_row)


def flash_attention_block(q, k, v, w_o, b_o, residual, gamma, beta, nhead, cfg):
    """(B,Sq,D),(B,Sk,D),(B,Sk,D) -> LayerNorm(residual + MHA(q,k,v) @ W_o)."""
    B, Sq, D = q.shape
    Sk = k.shape[1]
    hd = D // nhead
    tq = _pick_tile(Sq, cfg["attn_tile"])
    tk = _pick_tile(Sk, cfg["attn_tile"])
    q_map = lambda b, qi, ki: (b, qi, 0)
    kv_map = lambda b, qi, ki: (b, ki, 0)
    return pl.pallas_call(
        partial(_flash_attn_ln_kernel, nhead),
        grid=(B, Sq // tq, Sk // tk),
        in_specs=[
            pl.BlockSpec((1, tq, D), q_map),
            pl.BlockSpec((1, tk, D), kv_map),
            pl.BlockSpec((1, tk, D), kv_map),
            _const_spec((D, D), 3),           # W_o (pre-transposed)
            _const_spec((1, D), 3),           # b_o
            pl.BlockSpec((1, tq, D), q_map),  # residual
            _const_spec((1, D), 3),           # gamma
            _const_spec((1, D), 3),           # beta
        ],
        out_specs=pl.BlockSpec((1, tq, D), q_map),
        out_shape=jax.ShapeDtypeStruct((B, Sq, D), jnp.float32),
        scratch_shapes=[
            pltpu.VMEM((nhead, tq, 1), jnp.float32),    # running max  m
            pltpu.VMEM((nhead, tq, 1), jnp.float32),    # running sum  l
            pltpu.VMEM((nhead, tq, hd), jnp.float32),   # running ctx  acc
        ],
        compiler_params=_params(cfg, ("parallel", "parallel", "arbitrary")),
    )(q, k, v, w_o, b_o, residual, gamma, beta)


def ffn_add_layernorm(x2d, w1_t, b1, w2_t, b2, gamma, beta, cfg):
    M, D = x2d.shape
    Dff = w1_t.shape[1]
    tm = _pick_tile(M, cfg["ffn_row_tile"])
    return pl.pallas_call(
        _ffn_add_ln_kernel,
        grid=(pl.cdiv(M, tm),),
        in_specs=[
            pl.BlockSpec((tm, D), lambda i: (i, 0)),
            _const_spec((D, Dff), 1),
            _const_spec((1, Dff), 1),
            _const_spec((Dff, D), 1),
            _const_spec((1, D), 1),
            _const_spec((1, D), 1),
            _const_spec((1, D), 1),
        ],
        out_specs=pl.BlockSpec((tm, D), lambda i: (i, 0)),
        out_shape=jax.ShapeDtypeStruct((M, D), jnp.float32),
        compiler_params=_params(cfg, ("parallel",)),
    )(x2d, w1_t, b1, w2_t, b2, gamma, beta)


# ---------------------------------------------------------------------------
# Decoder layer forward
# ---------------------------------------------------------------------------

def decoder_layer(tgt, memory, pp, nhead, cfg=None):
    # TODO(synk): attn_mask / key_padding_mask inputs (default None in the
    # PyTorch spec) are not implemented; this is the unmasked, eval-mode path.
    if cfg is None:
        cfg = _chip_config()
    B, S, D = tgt.shape
    Sm = memory.shape[1]
    M, Mm = B * S, B * Sm

    # ---- self-attention block (q scale folded into packed QKV weights) ----
    q, k, v = fused_projection(tgt.reshape(M, D),
                               pp["sa_w_qkv"], pp["sa_b_qkv"], (D, D, D), cfg)
    x = flash_attention_block(q.reshape(B, S, D), k.reshape(B, S, D),
                              v.reshape(B, S, D), pp["sa_w_o"], pp["sa_b_o"],
                              tgt, pp["norm1_w"], pp["norm1_b"], nhead, cfg)

    # ---- cross-attention block ----
    (q2,) = fused_projection(x.reshape(M, D), pp["ca_w_q"], pp["ca_b_q"],
                             (D,), cfg)
    k2, v2 = fused_projection(memory.reshape(Mm, D),
                              pp["ca_w_kv"], pp["ca_b_kv"], (D, D), cfg)
    x = flash_attention_block(q2.reshape(B, S, D), k2.reshape(B, Sm, D),
                              v2.reshape(B, Sm, D), pp["ca_w_o"], pp["ca_b_o"],
                              x, pp["norm2_w"], pp["norm2_b"], nhead, cfg)

    # ---- feed-forward block ----
    y = ffn_add_layernorm(x.reshape(M, D), pp["w1"], pp["b1"], pp["w2"],
                          pp["b2"], pp["norm3_w"], pp["norm3_b"], cfg)
    return y.reshape(B, S, D)


# ---------------------------------------------------------------------------
# Parameters (torch layout) + one-time kernel-friendly preparation
# ---------------------------------------------------------------------------

def init_params(key, d_model, nhead, d_ff):
    keys = jax.random.split(key, 8)

    def mha_params(k):
        k1, k2 = jax.random.split(k)
        return {
            "in_proj_weight": jax.random.normal(
                k1, (3 * d_model, d_model), jnp.float32) * 0.05,
            "in_proj_bias": jnp.zeros((3 * d_model,), jnp.float32),
            "out_proj_weight": jax.random.normal(
                k2, (d_model, d_model), jnp.float32) * 0.05,
            "out_proj_bias": jnp.zeros((d_model,), jnp.float32),
        }

    return {
        "self_attn": mha_params(keys[0]),
        "cross_attn": mha_params(keys[1]),
        "w1": jax.random.normal(keys[2], (d_ff, d_model), jnp.float32) * 0.05,
        "b1": jnp.zeros((d_ff,), jnp.float32),
        "w2": jax.random.normal(keys[3], (d_model, d_ff), jnp.float32) * 0.05,
        "b2": jnp.zeros((d_model,), jnp.float32),
        "norm1_w": jnp.ones((d_model,), jnp.float32),
        "norm1_b": jnp.zeros((d_model,), jnp.float32),
        "norm2_w": jnp.ones((d_model,), jnp.float32),
        "norm2_b": jnp.zeros((d_model,), jnp.float32),
        "norm3_w": jnp.ones((d_model,), jnp.float32),
        "norm3_b": jnp.zeros((d_model,), jnp.float32),
    }


def prepare_params(p, d_model, nhead):
    """Transpose / pack / cast weights ONCE; fold the 1/sqrt(hd) softmax scale
    into the Q projection (weights AND bias) so no kernel ever scales."""
    D = d_model
    scale = 1.0 / math.sqrt(D // nhead)

    def row(b):
        return b.reshape(1, -1).astype(jnp.float32)

    sa, ca = p["self_attn"], p["cross_attn"]

    sa_w = sa["in_proj_weight"].T                          # (D, 3D) = [Wq|Wk|Wv]
    sa_w = jnp.concatenate([sa_w[:, :D] * scale, sa_w[:, D:]], axis=1)
    sa_b = jnp.concatenate([sa["in_proj_bias"][:D] * scale,
                            sa["in_proj_bias"][D:]])

    return {
        # self-attention
        "sa_w_qkv": sa_w.astype(jnp.bfloat16),                          # (D, 3D)
        "sa_b_qkv": row(sa_b),
        "sa_w_o": sa["out_proj_weight"].T.astype(jnp.bfloat16),         # (D, D)
        "sa_b_o": row(sa["out_proj_bias"]),
        # cross-attention
        "ca_w_q": (ca["in_proj_weight"][:D].T * scale).astype(jnp.bfloat16),
        "ca_b_q": row(ca["in_proj_bias"][:D] * scale),
        "ca_w_kv": ca["in_proj_weight"][D:].T.astype(jnp.bfloat16),     # (D, 2D)
        "ca_b_kv": row(ca["in_proj_bias"][D:]),
        "ca_w_o": ca["out_proj_weight"].T.astype(jnp.bfloat16),
        "ca_b_o": row(ca["out_proj_bias"]),
        # FFN
        "w1": p["w1"].T.astype(jnp.bfloat16),                           # (D, Dff)
        "b1": row(p["b1"]),
        "w2": p["w2"].T.astype(jnp.bfloat16),                           # (Dff, D)
        "b2": row(p["b2"]),
        # LayerNorms
        "norm1_w": row(p["norm1_w"]), "norm1_b": row(p["norm1_b"]),
        "norm2_w": row(p["norm2_w"]), "norm2_b": row(p["norm2_b"]),
        "norm3_w": row(p["norm3_w"]), "norm3_b": row(p["norm3_b"]),
    }


if __name__ == "__main__":
    B, S_TGT, S_MEM = 2, 8, 8
    D_MODEL, NHEAD, D_FF = 32, 4, 64

    key = jax.random.PRNGKey(0)
    k_p, k_t, k_m = jax.random.split(key, 3)
    params = init_params(k_p, D_MODEL, NHEAD, D_FF)
    pp = prepare_params(params, D_MODEL, NHEAD)

    tgt = jax.random.normal(k_t, (B, S_TGT, D_MODEL), jnp.float32)
    memory = jax.random.normal(k_m, (B, S_MEM, D_MODEL), jnp.float32)

    # Resolve per-chip config and the Buffered(1) feature probe eagerly
    # (outside jit), then close over them.
    cfg = _chip_config()
    _single_buffer_ok()

    fwd = jax.jit(partial(decoder_layer, nhead=NHEAD, cfg=cfg))
    out = jax.block_until_ready(fwd(tgt, memory, pp))

    assert out.shape == (B, S_TGT, D_MODEL)
    assert bool(jnp.all(jnp.isfinite(out)))
    print("KERNEL_OK")
</pallas_src>

<mosaic_0001>
module attributes {stable_mosaic.version = 11 : i64} {
  func.func @_split_proj_kernel(%arg0: i32, %arg1: memref<16x32xf32, #tpu.memory_space<vmem>>, %arg2: memref<32x64xbf16, #tpu.memory_space<vmem>>, %arg3: memref<1x64xf32, #tpu.memory_space<vmem>>, %arg4: memref<16x32xbf16, #tpu.memory_space<vmem>>, %arg5: memref<16x32xbf16, #tpu.memory_space<vmem>>) attributes {dimension_semantics = [#tpu.dimension_semantics<parallel>], iteration_bounds = array<i64: 1>, scalar_prefetch = 0 : i64, scratch_operands = 0 : i64, tpu.core_type = #tpu.core_type<tc>, window_params = [{transform_indices = @transform_0, window_bounds = array<i64: 16, 32>}, {pipeline_mode = #tpu.pipeline_mode<synchronous>, transform_indices = @transform_1, window_bounds = array<i64: 32, 64>}, {pipeline_mode = #tpu.pipeline_mode<synchronous>, transform_indices = @transform_2, window_bounds = array<i64: 1, 64>}, {transform_indices = @transform_3, window_bounds = array<i64: 16, 32>}, {transform_indices = @transform_4, window_bounds = array<i64: 16, 32>}]} {
    %c0 = arith.constant 0 : index
    %c0_0 = arith.constant 0 : index
    %0 = vector.load %arg1[%c0, %c0_0] : memref<16x32xf32, #tpu.memory_space<vmem>>, vector<16x32xf32>
    %1 = arith.truncf %0 : vector<16x32xf32> to vector<16x32xbf16>
    %c0_1 = arith.constant 0 : index
    %c0_2 = arith.constant 0 : index
    %2 = vector.load %arg2[%c0_1, %c0_2] : memref<32x64xbf16, #tpu.memory_space<vmem>>, vector<32x32xbf16>
    %cst = arith.constant dense<0.000000e+00> : vector<16x32xf32>
    %3 = tpu.matmul %1, %2, %cst {dimension_numbers = #tpu.dot_dimension_numbers<[1], [0], [0], [1], [0, 0, 1, 1], [], []>} : vector<16x32xbf16>, vector<32x32xbf16>, vector<16x32xf32> -> vector<16x32xf32>
    %c0_3 = arith.constant 0 : index
    %c0_4 = arith.constant 0 : index
    %4 = vector.load %arg3[%c0_3, %c0_4] : memref<1x64xf32, #tpu.memory_space<vmem>>, vector<1x32xf32>
    %5 = vector.broadcast %4 : vector<1x32xf32> to vector<16x32xf32>
    %6 = arith.addf %3, %5 : vector<16x32xf32>
    %7 = arith.truncf %6 : vector<16x32xf32> to vector<16x32xbf16>
    %c0_5 = arith.constant 0 : index
    %c0_6 = arith.constant 0 : index
    %8 = vector.load %arg4[%c0_5, %c0_6] : memref<16x32xbf16, #tpu.memory_space<vmem>>, vector<16x32xbf16>
    tpu.vector_store %arg4[%c0_5, %c0_6], %7 {strides = array<i32>} : memref<16x32xbf16, #tpu.memory_space<vmem>>, vector<16x32xbf16>,
    %c0_7 = arith.constant 0 : index
    %c32 = arith.constant 32 : index
    %9 = vector.load %arg2[%c0_7, %c32] : memref<32x64xbf16, #tpu.memory_space<vmem>>, vector<32x32xbf16>
    %cst_8 = arith.constant dense<0.000000e+00> : vector<16x32xf32>
    %10 = tpu.matmul %1, %9, %cst_8 {dimension_numbers = #tpu.dot_dimension_numbers<[1], [0], [0], [1], [0, 0, 1, 1], [], []>} : vector<16x32xbf16>, vector<32x32xbf16>, vector<16x32xf32> -> vector<16x32xf32>
    %c0_9 = arith.constant 0 : index
    %c32_10 = arith.constant 32 : index
    %11 = vector.load %arg3[%c0_9, %c32_10] : memref<1x64xf32, #tpu.memory_space<vmem>>, vector<1x32xf32>
    %12 = vector.broadcast %11 : vector<1x32xf32> to vector<16x32xf32>
    %13 = arith.addf %10, %12 : vector<16x32xf32>
    %14 = arith.truncf %13 : vector<16x32xf32> to vector<16x32xbf16>
    %c0_11 = arith.constant 0 : index
    %c0_12 = arith.constant 0 : index
    %15 = vector.load %arg5[%c0_11, %c0_12] : memref<16x32xbf16, #tpu.memory_space<vmem>>, vector<16x32xbf16>
    tpu.vector_store %arg5[%c0_11, %c0_12], %14 {strides = array<i32>} : memref<16x32xbf16, #tpu.memory_space<vmem>>, vector<16x32xbf16>,
    return
  }
  func.func @transform_0(%arg0: i32) -> (i32, i32) {
    %c0_i32 = arith.constant 0 : i32
    %c0_i32_0 = arith.constant 0 : i32
    return %arg0, %c0_i32 : i32, i32
  }
  func.func @transform_1(%arg0: i32) -> (i32, i32) {
    %c0_i32 = arith.constant 0 : i32
    %c0_i32_0 = arith.constant 0 : i32
    %c0_i32_1 = arith.constant 0 : i32
    return %c0_i32, %c0_i32_0 : i32, i32
  }
  func.func @transform_2(%arg0: i32) -> (i32, i32) {
    %c0_i32 = arith.constant 0 : i32
    %c0_i32_0 = arith.constant 0 : i32
    %c0_i32_1 = arith.constant 0 : i32
    return %c0_i32, %c0_i32_0 : i32, i32
  }
  func.func @transform_3(%arg0: i32) -> (i32, i32) {
    %c0_i32 = arith.constant 0 : i32
    %c0_i32_0 = arith.constant 0 : i32
    return %arg0, %c0_i32 : i32, i32
  }
  func.func @transform_4(%arg0: i32) -> (i32, i32) {
    %c0_i32 = arith.constant 0 : i32
    %c0_i32_0 = arith.constant 0 : i32
    return %arg0, %c0_i32 : i32, i32
  }
}

module attributes {stable_mosaic.version = 11 : i64} {
  func.func @_flash_attn_ln_kernel(%arg0: i32, %arg1: i32, %arg2: i32, %arg3: memref<1x8x32xbf16, #tpu.memory_space<vmem>>, %arg4: memref<1x8x32xbf16, #tpu.memory_space<vmem>>, %arg5: memref<1x8x32xbf16, #tpu.memory_space<vmem>>, %arg6: memref<32x32xbf16, #tpu.memory_space<vmem>>, %arg7: memref<1x32xf32, #tpu.memory_space<vmem>>, %arg8: memref<1x8x32xf32, #tpu.memory_space<vmem>>, %arg9: memref<1x32xf32, #tpu.memory_space<vmem>>, %arg10: memref<1x32xf32, #tpu.memory_space<vmem>>, %arg11: memref<1x8x32xf32, #tpu.memory_space<vmem>>, %arg12: memref<4x8x1xf32, #tpu.memory_space<vmem>>, %arg13: memref<4x8x1xf32, #tpu.memory_space<vmem>>, %arg14: memref<4x8x8xf32, #tpu.memory_space<vmem>>) attributes {dimension_semantics = [#tpu.dimension_semantics<parallel>, #tpu.dimension_semantics<parallel>, #tpu.dimension_semantics<arbitrary>], iteration_bounds = array<i64: 2, 1, 1>, scalar_prefetch = 0 : i64, scratch_operands = 3 : i64, tpu.core_type = #tpu.core_type<tc>, window_params = [{transform_indices = @transform_0, window_bounds = array<i64: 1, 8, 32>}, {transform_indices = @transform_1, window_bounds = array<i64: 1, 8, 32>}, {transform_indices = @transform_2, window_bounds = array<i64: 1, 8, 32>}, {pipeline_mode = #tpu.pipeline_mode<synchronous>, transform_indices = @transform_3, window_bounds = array<i64: 32, 32>}, {pipeline_mode = #tpu.pipeline_mode<synchronous>, transform_indices = @transform_4, window_bounds = array<i64: 1, 32>}, {transform_indices = @transform_5, window_bounds = array<i64: 1, 8, 32>}, {pipeline_mode = #tpu.pipeline_mode<synchronous>, transform_indices = @transform_6, window_bounds = array<i64: 1, 32>}, {pipeline_mode = #tpu.pipeline_mode<synchronous>, transform_indices = @transform_7, window_bounds = array<i64: 1, 32>}, {transform_indices = @transform_8, window_bounds = array<i64: 1, 8, 32>}]} {
    %c0_i32 = arith.constant 0 : i32
    %0 = arith.cmpi eq, %arg2, %c0_i32 : i32
    %1 = arith.extui %0 : i1 to i32
    %c0_i32_0 = arith.constant 0 : i32
    %2 = arith.cmpi ne, %1, %c0_i32_0 : i32
    scf.if %2 {
      %cst_95 = arith.constant 0xFF800000 : f32
      %156 = vector.broadcast %cst_95 : f32 to vector<4x8x1xf32>
      %c0_96 = arith.constant 0 : index
      %c0_97 = arith.constant 0 : index
      %c0_98 = arith.constant 0 : index
      %157 = vector.load %arg12[%c0_96, %c0_97, %c0_98] : memref<4x8x1xf32, #tpu.memory_space<vmem>>, vector<4x8x1xf32>
      tpu.vector_store %arg12[%c0_96, %c0_97, %c0_98], %156 {strides = array<i32>} : memref<4x8x1xf32, #tpu.memory_space<vmem>>, vector<4x8x1xf32>,
      %cst_99 = arith.constant 0.000000e+00 : f32
      %158 = vector.broadcast %cst_99 : f32 to vector<4x8x1xf32>
      %c0_100 = arith.constant 0 : index
      %c0_101 = arith.constant 0 : index
      %c0_102 = arith.constant 0 : index
      %159 = vector.load %arg13[%c0_100, %c0_101, %c0_102] : memref<4x8x1xf32, #tpu.memory_space<vmem>>, vector<4x8x1xf32>
      tpu.vector_store %arg13[%c0_100, %c0_101, %c0_102], %158 {strides = array<i32>} : memref<4x8x1xf32, #tpu.memory_space<vmem>>, vector<4x8x1xf32>,
      %cst_103 = arith.constant 0.000000e+00 : f32
      %160 = vector.broadcast %cst_103 : f32 to vector<4x8x8xf32>
      %c0_104 = arith.constant 0 : index
      %c0_105 = arith.constant 0 : index
      %c0_106 = arith.constant 0 : index
      %161 = vector.load %arg14[%c0_104, %c0_105, %c0_106] : memref<4x8x8xf32, #tpu.memory_space<vmem>>, vector<4x8x8xf32>
      tpu.vector_store %arg14[%c0_104, %c0_105, %c0_106], %160 {strides = array<i32>} : memref<4x8x8xf32, #tpu.memory_space<vmem>>, vector<4x8x8xf32>,
    } else {
    }
    %c0 = arith.constant 0 : index
    %c0_1 = arith.constant 0 : index
    %c0_2 = arith.constant 0 : index
    %3 = vector.load %arg3[%c0, %c0_1, %c0_2] : memref<1x8x32xbf16, #tpu.memory_space<vmem>>, vector<1x8x32xbf16>
    %4 = vector.shape_cast %3 : vector<1x8x32xbf16> to vector<8x32xbf16>
    %c0_3 = arith.constant 0 : index
    %c0_4 = arith.constant 0 : index
    %c0_5 = arith.constant 0 : index
    %5 = vector.load %arg4[%c0_3, %c0_4, %c0_5] : memref<1x8x32xbf16, #tpu.memory_space<vmem>>, vector<1x8x32xbf16>
    %6 = vector.shape_cast %5 : vector<1x8x32xbf16> to vector<8x32xbf16>
    %c0_6 = arith.constant 0 : index
    %c0_7 = arith.constant 0 : index
    %c0_8 = arith.constant 0 : index
    %7 = vector.load %arg5[%c0_6, %c0_7, %c0_8] : memref<1x8x32xbf16, #tpu.memory_space<vmem>>, vector<1x8x32xbf16>
    %8 = vector.shape_cast %7 : vector<1x8x32xbf16> to vector<8x32xbf16>
    %9 = vector.extract_strided_slice %4 {offsets = [0, 0], sizes = [8, 8], strides = [1, 1]} : vector<8x32xbf16> to vector<8x8xbf16>
    %10 = vector.extract_strided_slice %6 {offsets = [0, 0], sizes = [8, 8], strides = [1, 1]} : vector<8x32xbf16> to vector<8x8xbf16>
    %cst = arith.constant dense<0.000000e+00> : vector<8x8xf32>
    %11 = tpu.matmul %9, %10, %cst {dimension_numbers = #tpu.dot_dimension_numbers<[1], [1], [0], [0], [0, 0, 1, 0], [], []>} : vector<8x8xbf16>, vector<8x8xbf16>, vector<8x8xf32> -> vector<8x8xf32>
    %c0_9 = arith.constant 0 : index
    %c0_10 = arith.constant 0 : index
    %c0_11 = arith.constant 0 : index
    %12 = vector.load %arg12[%c0_9, %c0_10, %c0_11] : memref<4x8x1xf32, #tpu.memory_space<vmem>>, vector<1x8x1xf32>
    %13 = vector.shape_cast %12 : vector<1x8x1xf32> to vector<8x1xf32>
    %cst_12 = arith.constant dense<0xFF800000> : vector<8xf32>
    %14 = vector.multi_reduction <maximumf>, %11, %cst_12 [1] : vector<8x8xf32> to vector<8xf32>
    %15 = vector.shape_cast %14 : vector<8xf32> to vector<8x1xf32>
    %16 = arith.maximumf %13, %15 : vector<8x1xf32>
    %17 = arith.subf %13, %16 : vector<8x1xf32>
    %18 = math.exp %17 : vector<8x1xf32>
    %19 = vector.broadcast %16 : vector<8x1xf32> to vector<8x8xf32>
    %20 = arith.subf %11, %19 : vector<8x8xf32>
    %21 = math.exp %20 : vector<8x8xf32>
    %c0_13 = arith.constant 0 : index
    %c0_14 = arith.constant 0 : index
    %c0_15 = arith.constant 0 : index
    %22 = vector.load %arg13[%c0_13, %c0_14, %c0_15] : memref<4x8x1xf32, #tpu.memory_space<vmem>>, vector<1x8x1xf32>
    %23 = vector.shape_cast %22 : vector<1x8x1xf32> to vector<8x1xf32>
    %24 = arith.mulf %18, %23 : vector<8x1xf32>
    %cst_16 = arith.constant dense<0.000000e+00> : vector<8xf32>
    %25 = vector.multi_reduction <add>, %21, %cst_16 [1] : vector<8x8xf32> to vector<8xf32>
    %26 = vector.shape_cast %25 : vector<8xf32> to vector<8x1xf32>
    %27 = arith.addf %24, %26 : vector<8x1xf32>
    %c0_17 = arith.constant 0 : index
    %c0_18 = arith.constant 0 : index
    %c0_19 = arith.constant 0 : index
    %28 = vector.load %arg13[%c0_17, %c0_18, %c0_19] : memref<4x8x1xf32, #tpu.memory_space<vmem>>, vector<1x8x1xf32>
    %29 = vector.shape_cast %28 : vector<1x8x1xf32> to vector<8x1xf32>
    %30 = vector.shape_cast %27 : vector<8x1xf32> to vector<1x8x1xf32>
    tpu.vector_store %arg13[%c0_17, %c0_18, %c0_19], %30 {strides = array<i32>} : memref<4x8x1xf32, #tpu.memory_space<vmem>>, vector<1x8x1xf32>,
    %c0_20 = arith.constant 0 : index
    %c0_21 = arith.constant 0 : index
    %c0_22 = arith.constant 0 : index
    %31 = vector.load %arg14[%c0_20, %c0_21, %c0_22] : memref<4x8x8xf32, #tpu.memory_space<vmem>>, vector<1x8x8xf32>
    %32 = vector.shape_cast %31 : vector<1x8x8xf32> to vector<8x8xf32>
    %33 = vector.broadcast %18 : vector<8x1xf32> to vector<8x8xf32>
    %34 = arith.mulf %33, %32 : vector<8x8xf32>
    %35 = arith.truncf %21 : vector<8x8xf32> to vector<8x8xbf16>
    %36 = vector.extract_strided_slice %8 {offsets = [0, 0], sizes = [8, 8], strides = [1, 1]} : vector<8x32xbf16> to vector<8x8xbf16>
    %cst_23 = arith.constant dense<0.000000e+00> : vector<8x8xf32>
    %37 = tpu.matmul %35, %36, %cst_23 {dimension_numbers = #tpu.dot_dimension_numbers<[1], [0], [0], [1], [0, 0, 1, 1], [], []>} : vector<8x8xbf16>, vector<8x8xbf16>, vector<8x8xf32> -> vector<8x8xf32>
    %38 = arith.addf %34, %37 : vector<8x8xf32>
    %c0_24 = arith.constant 0 : index
    %c0_25 = arith.constant 0 : index
    %c0_26 = arith.constant 0 : index
    %39 = vector.load %arg14[%c0_24, %c0_25, %c0_26] : memref<4x8x8xf32, #tpu.memory_space<vmem>>, vector<1x8x8xf32>
    %40 = vector.shape_cast %39 : vector<1x8x8xf32> to vector<8x8xf32>
    %41 = vector.shape_cast %38 : vector<8x8xf32> to vector<1x8x8xf32>
    tpu.vector_store %arg14[%c0_24, %c0_25, %c0_26], %41 {strides = array<i32>} : memref<4x8x8xf32, #tpu.memory_space<vmem>>, vector<1x8x8xf32>,
    %c0_27 = arith.constant 0 : index
    %c0_28 = arith.constant 0 : index
    %c0_29 = arith.constant 0 : index
    %42 = vector.load %arg12[%c0_27, %c0_28, %c0_29] : memref<4x8x1xf32, #tpu.memory_space<vmem>>, vector<1x8x1xf32>
    %43 = vector.shape_cast %42 : vector<1x8x1xf32> to vector<8x1xf32>
    %44 = vector.shape_cast %16 : vector<8x1xf32> to vector<1x8x1xf32>
    tpu.vector_store %arg12[%c0_27, %c0_28, %c0_29], %44 {strides = array<i32>} : memref<4x8x1xf32, #tpu.memory_space<vmem>>, vector<1x8x1xf32>,
    %45 = vector.extract_strided_slice %4 {offsets = [0, 8], sizes = [8, 8], strides = [1, 1]} : vector<8x32xbf16> to vector<8x8xbf16>
    %46 = vector.extract_strided_slice %6 {offsets = [0, 8], sizes = [8, 8], strides = [1, 1]} : vector<8x32xbf16> to vector<8x8xbf16>
    %cst_30 = arith.constant dense<0.000000e+00> : vector<8x8xf32>
    %47 = tpu.matmul %45, %46, %cst_30 {dimension_numbers = #tpu.dot_dimension_numbers<[1], [1], [0], [0], [0, 0, 1, 0], [], []>} : vector<8x8xbf16>, vector<8x8xbf16>, vector<8x8xf32> -> vector<8x8xf32>
    %c1 = arith.constant 1 : index
    %c0_31 = arith.constant 0 : index
    %c0_32 = arith.constant 0 : index
    %48 = vector.load %arg12[%c1, %c0_31, %c0_32] : memref<4x8x1xf32, #tpu.memory_space<vmem>>, vector<1x8x1xf32>
    %49 = vector.shape_cast %48 : vector<1x8x1xf32> to vector<8x1xf32>
    %cst_33 = arith.constant dense<0xFF800000> : vector<8xf32>
    %50 = vector.multi_reduction <maximumf>, %47, %cst_33 [1] : vector<8x8xf32> to vector<8xf32>
    %51 = vector.shape_cast %50 : vector<8xf32> to vector<8x1xf32>
    %52 = arith.maximumf %49, %51 : vector<8x1xf32>
    %53 = arith.subf %49, %52 : vector<8x1xf32>
    %54 = math.exp %53 : vector<8x1xf32>
    %55 = vector.broadcast %52 : vector<8x1xf32> to vector<8x8xf32>
    %56 = arith.subf %47, %55 : vector<8x8xf32>
    %57 = math.exp %56 : vector<8x8xf32>
    %c1_34 = arith.constant 1 : index
    %c0_35 = arith.constant 0 : index
    %c0_36 = arith.constant 0 : index
    %58 = vector.load %arg13[%c1_34, %c0_35, %c0_36] : memref<4x8x1xf32, #tpu.memory_space<vmem>>, vector<1x8x1xf32>
    %59 = vector.shape_cast %58 : vector<1x8x1xf32> to vector<8x1xf32>
    %60 = arith.mulf %54, %59 : vector<8x1xf32>
    %cst_37 = arith.constant dense<0.000000e+00> : vector<8xf32>
    %61 = vector.multi_reduction <add>, %57, %cst_37 [1] : vector<8x8xf32> to vector<8xf32>
    %62 = vector.shape_cast %61 : vector<8xf32> to vector<8x1xf32>
    %63 = arith.addf %60, %62 : vector<8x1xf32>
    %c1_38 = arith.constant 1 : index
    %c0_39 = arith.constant 0 : index
    %c0_40 = arith.constant 0 : index
    %64 = vector.load %arg13[%c1_38, %c0_39, %c0_40] : memref<4x8x1xf32, #tpu.memory_space<vmem>>, vector<1x8x1xf32>
    %65 = vector.shape_cast %64 : vector<1x8x1xf32> to vector<8x1xf32>
    %66 = vector.shape_cast %63 : vector<8x1xf32> to vector<1x8x1xf32>
    tpu.vector_store %arg13[%c1_38, %c0_39, %c0_40], %66 {strides = array<i32>} : memref<4x8x1xf32, #tpu.memory_space<vmem>>, vector<1x8x1xf32>,
    %c1_41 = arith.constant 1 : index
    %c0_42 = arith.constant 0 : index
    %c0_43 = arith.constant 0 : index
    %67 = vector.load %arg14[%c1_41, %c0_42, %c0_43] : memref<4x8x8xf32, #tpu.memory_space<vmem>>, vector<1x8x8xf32>
    %68 = vector.shape_cast %67 : vector<1x8x8xf32> to vector<8x8xf32>
    %69 = vector.broadcast %54 : vector<8x1xf32> to vector<8x8xf32>
    %70 = arith.mulf %69, %68 : vector<8x8xf32>
    %71 = arith.truncf %57 : vector<8x8xf32> to vector<8x8xbf16>
    %72 = vector.extract_strided_slice %8 {offsets = [0, 8], sizes = [8, 8], strides = [1, 1]} : vector<8x32xbf16> to vector<8x8xbf16>
    %cst_44 = arith.constant dense<0.000000e+00> : vector<8x8xf32>
    %73 = tpu.matmul %71, %72, %cst_44 {dimension_numbers = #tpu.dot_dimension_numbers<[1], [0], [0], [1], [0, 0, 1, 1], [], []>} : vector<8x8xbf16>, vector<8x8xbf16>, vector<8x8xf32> -> vector<8x8xf32>
    %74 = arith.addf %70, %73 : vector<8x8xf32>
    %c1_45 = arith.constant 1 : index
    %c0_46 = arith.constant 0 : index
    %c0_47 = arith.constant 0 : index
    %75 = vector.load %arg14[%c1_45, %c0_46, %c0_47] : memref<4x8x8xf32, #tpu.memory_space<vmem>>, vector<1x8x8xf32>
    %76 = vector.shape_cast %75 : vector<1x8x8xf32> to vector<8x8xf32>
    %77 = vector.shape_cast %74 : vector<8x8xf32> to vector<1x8x8xf32>
    tpu.vector_store %arg14[%c1_45, %c0_46, %c0_47], %77 {strides = array<i32>} : memref<4x8x8xf32, #tpu.memory_space<vmem>>, vector<1x8x8xf32>,
    %c1_48 = arith.constant 1 : index
    %c0_49 = arith.constant 0 : index
    %c0_50 = arith.constant 0 : index
    %78 = vector.load %arg12[%c1_48, %c0_49, %c0_50] : memref<4x8x1xf32, #tpu.memory_space<vmem>>, vector<1x8x1xf32>
    %79 = vector.shape_cast %78 : vector<1x8x1xf32> to vector<8x1xf32>
    %80 = vector.shape_cast %52 : vector<8x1xf32> to vector<1x8x1xf32>
    tpu.vector_store %arg12[%c1_48, %c0_49, %c0_50], %80 {strides = array<i32>} : memref<4x8x1xf32, #tpu.memory_space<vmem>>, vector<1x8x1xf32>,
    %81 = vector.extract_strided_slice %4 {offsets = [0, 16], sizes = [8, 8], strides = [1, 1]} : vector<8x32xbf16> to vector<8x8xbf16>
    %82 = vector.extract_strided_slice %6 {offsets = [0, 16], sizes = [8, 8], strides = [1, 1]} : vector<8x32xbf16> to vector<8x8xbf16>
    %cst_51 = arith.constant dense<0.000000e+00> : vector<8x8xf32>
    %83 = tpu.matmul %81, %82, %cst_51 {dimension_numbers = #tpu.dot_dimension_numbers<[1], [1], [0], [0], [0, 0, 1, 0], [], []>} : vector<8x8xbf16>, vector<8x8xbf16>, vector<8x8xf32> -> vector<8x8xf32>
    %c2 = arith.constant 2 : index
    %c0_52 = arith.constant 0 : index
    %c0_53 = arith.constant 0 : index
    %84 = vector.load %arg12[%c2, %c0_52, %c0_53] : memref<4x8x1xf32, #tpu.memory_space<vmem>>, vector<1x8x1xf32>
    %85 = vector.shape_cast %84 : vector<1x8x1xf32> to vector<8x1xf32>
    %cst_54 = arith.constant dense<0xFF800000> : vector<8xf32>
    %86 = vector.multi_reduction <maximumf>, %83, %cst_54 [1] : vector<8x8xf32> to vector<8xf32>
    %87 = vector.shape_cast %86 : vector<8xf32> to vector<8x1xf32>
    %88 = arith.maximumf %85, %87 : vector<8x1xf32>
    %89 = arith.subf %85, %88 : vector<8x1xf32>
    %90 = math.exp %89 : vector<8x1xf32>
    %91 = vector.broadcast %88 : vector<8x1xf32> to vector<8x8xf32>
    %92 = arith.subf %83, %91 : vector<8x8xf32>
    %93 = math.exp %92 : vector<8x8xf32>
    %c2_55 = arith.constant 2 : index
    %c0_56 = arith.constant 0 : index
    %c0_57 = arith.constant 0 : index
    %94 = vector.load %arg13[%c2_55, %c0_56, %c0_57] : memref<4x8x1xf32, #tpu.memory_space<vmem>>, vector<1x8x1xf32>
    %95 = vector.shape_cast %94 : vector<1x8x1xf32> to vector<8x1xf32>
    %96 = arith.mulf %90, %95 : vector<8x1xf32>
    %cst_58 = arith.constant dense<0.000000e+00> : vector<8xf32>
    %97 = vector.multi_reduction <add>, %93, %cst_58 [1] : vector<8x8xf32> to vector<8xf32>
    %98 = vector.shape_cast %97 : vector<8xf32> to vector<8x1xf32>
    %99 = arith.addf %96, %98 : vector<8x1xf32>
    %c2_59 = arith.constant 2 : index
    %c0_60 = arith.constant 0 : index
    %c0_61 = arith.constant 0 : index
    %100 = vector.load %arg13[%c2_59, %c0_60, %c0_61] : memref<4x8x1xf32, #tpu.memory_space<vmem>>, vector<1x8x1xf32>
    %101 = vector.shape_cast %100 : vector<1x8x1xf32> to vector<8x1xf32>
    %102 = vector.shape_cast %99 : vector<8x1xf32> to vector<1x8x1xf32>
    tpu.vector_store %arg13[%c2_59, %c0_60, %c0_61], %102 {strides = array<i32>} : memref<4x8x1xf32, #tpu.memory_space<vmem>>, vector<1x8x1xf32>,
    %c2_62 = arith.constant 2 : index
    %c0_63 = arith.constant 0 : index
    %c0_64 = arith.constant 0 : index
    %103 = vector.load %arg14[%c2_62, %c0_63, %c0_64] : memref<4x8x8xf32, #tpu.memory_space<vmem>>, vector<1x8x8xf32>
    %104 = vector.shape_cast %103 : vector<1x8x8xf32> to vector<8x8xf32>
    %105 = vector.broadcast %90 : vector<8x1xf32> to vector<8x8xf32>
    %106 = arith.mulf %105, %104 : vector<8x8xf32>
    %107 = arith.truncf %93 : vector<8x8xf32> to vector<8x8xbf16>
    %108 = vector.extract_strided_slice %8 {offsets = [0, 16], sizes = [8, 8], strides = [1, 1]} : vector<8x32xbf16> to vector<8x8xbf16>
    %cst_65 = arith.constant dense<0.000000e+00> : vector<8x8xf32>
    %109 = tpu.matmul %107, %108, %cst_65 {dimension_numbers = #tpu.dot_dimension_numbers<[1], [0], [0], [1], [0, 0, 1, 1], [], []>} : vector<8x8xbf16>, vector<8x8xbf16>, vector<8x8xf32> -> vector<8x8xf32>
    %110 = arith.addf %106, %109 : vector<8x8xf32>
    %c2_66 = arith.constant 2 : index
    %c0_67 = arith.constant 0 : index
    %c0_68 = arith.constant 0 : index
    %111 = vector.load %arg14[%c2_66, %c0_67, %c0_68] : memref<4x8x8xf32, #tpu.memory_space<vmem>>, vector<1x8x8xf32>
    %112 = vector.shape_cast %111 : vector<1x8x8xf32> to vector<8x8xf32>
    %113 = vector.shape_cast %110 : vector<8x8xf32> to vector<1x8x8xf32>
    tpu.vector_store %arg14[%c2_66, %c0_67, %c0_68], %113 {strides = array<i32>} : memref<4x8x8xf32, #tpu.memory_space<vmem>>, vector<1x8x8xf32>,
    %c2_69 = arith.constant 2 : index
    %c0_70 = arith.constant 0 : index
    %c0_71 = arith.constant 0 : index
    %114 = vector.load %arg12[%c2_69, %c0_70, %c0_71] : memref<4x8x1xf32, #tpu.memory_space<vmem>>, vector<1x8x1xf32>
    %115 = vector.shape_cast %114 : vector<1x8x1xf32> to vector<8x1xf32>
    %116 = vector.shape_cast %88 : vector<8x1xf32> to vector<1x8x1xf32>
    tpu.vector_store %arg12[%c2_69, %c0_70, %c0_71], %116 {strides = array<i32>} : memref<4x8x1xf32, #tpu.memory_space<vmem>>, vector<1x8x1xf32>,
    %117 = vector.extract_strided_slice %4 {offsets = [0, 24], sizes = [8, 8], strides = [1, 1]} : vector<8x32xbf16> to vector<8x8xbf16>
    %118 = vector.extract_strided_slice %6 {offsets = [0, 24], sizes = [8, 8], strides = [1, 1]} : vector<8x32xbf16> to vector<8x8xbf16>
    %cst_72 = arith.constant dense<0.000000e+00> : vector<8x8xf32>
    %119 = tpu.matmul %117, %118, %cst_72 {dimension_numbers = #tpu.dot_dimension_numbers<[1], [1], [0], [0], [0, 0, 1, 0], [], []>} : vector<8x8xbf16>, vector<8x8xbf16>, vector<8x8xf32> -> vector<8x8xf32>
    %c3 = arith.constant 3 : index
    %c0_73 = arith.constant 0 : index
    %c0_74 = arith.constant 0 : index
    %120 = vector.load %arg12[%c3, %c0_73, %c0_74] : memref<4x8x1xf32, #tpu.memory_space<vmem>>, vector<1x8x1xf32>
    %121 = vector.shape_cast %120 : vector<1x8x1xf32> to vector<8x1xf32>
    %cst_75 = arith.constant dense<0xFF800000> : vector<8xf32>
    %122 = vector.multi_reduction <maximumf>, %119, %cst_75 [1] : vector<8x8xf32> to vector<8xf32>
    %123 = vector.shape_cast %122 : vector<8xf32> to vector<8x1xf32>
    %124 = arith.maximumf %121, %123 : vector<8x1xf32>
    %125 = arith.subf %121, %124 : vector<8x1xf32>
    %126 = math.exp %125 : vector<8x1xf32>
    %127 = vector.broadcast %124 : vector<8x1xf32> to vector<8x8xf32>
    %128 = arith.subf %119, %127 : vector<8x8xf32>
    %129 = math.exp %128 : vector<8x8xf32>
    %c3_76 = arith.constant 3 : index
    %c0_77 = arith.constant 0 : index
    %c0_78 = arith.constant 0 : index
    %130 = vector.load %arg13[%c3_76, %c0_77, %c0_78] : memref<4x8x1xf32, #tpu.memory_space<vmem>>, vector<1x8x1xf32>
    %131 = vector.shape_cast %130 : vector<1x8x1xf32> to vector<8x1xf32>
    %132 = arith.mulf %126, %131 : vector<8x1xf32>
    %cst_79 = arith.constant dense<0.000000e+00> : vector<8xf32>
    %133 = vector.multi_reduction <add>, %129, %cst_79 [1] : vector<8x8xf32> to vector<8xf32>
    %134 = vector.shape_cast %133 : vector<8xf32> to vector<8x1xf32>
    %135 = arith.addf %132, %134 : vector<8x1xf32>
    %c3_80 = arith.constant 3 : index
    %c0_81 = arith.constant 0 : index
    %c0_82 = arith.constant 0 : index
    %136 = vector.load %arg13[%c3_80, %c0_81, %c0_82] : memref<4x8x1xf32, #tpu.memory_space<vmem>>, vector<1x8x1xf32>
    %137 = vector.shape_cast %136 : vector<1x8x1xf32> to vector<8x1xf32>
    %138 = vector.shape_cast %135 : vector<8x1xf32> to vector<1x8x1xf32>
    tpu.vector_store %arg13[%c3_80, %c0_81, %c0_82], %138 {strides = array<i32>} : memref<4x8x1xf32, #tpu.memory_space<vmem>>, vector<1x8x1xf32>,
    %c3_83 = arith.constant 3 : index
    %c0_84 = arith.constant 0 : index
    %c0_85 = arith.constant 0 : index
    %139 = vector.load %arg14[%c3_83, %c0_84, %c0_85] : memref<4x8x8xf32, #tpu.memory_space<vmem>>, vector<1x8x8xf32>
    %140 = vector.shape_cast %139 : vector<1x8x8xf32> to vector<8x8xf32>
    %141 = vector.broadcast %126 : vector<8x1xf32> to vector<8x8xf32>
    %142 = arith.mulf %141, %140 : vector<8x8xf32>
    %143 = arith.truncf %129 : vector<8x8xf32> to vector<8x8xbf16>
    %144 = vector.extract_strided_slice %8 {offsets = [0, 24], sizes = [8, 8], strides = [1, 1]} : vector<8x32xbf16> to vector<8x8xbf16>
    %cst_86 = arith.constant dense<0.000000e+00> : vector<8x8xf32>
    %145 = tpu.matmul %143, %144, %cst_86 {dimension_numbers = #tpu.dot_dimension_numbers<[1], [0], [0], [1], [0, 0, 1, 1], [], []>} : vector<8x8xbf16>, vector<8x8xbf16>, vector<8x8xf32> -> vector<8x8xf32>
    %146 = arith.addf %142, %145 : vector<8x8xf32>
    %c3_87 = arith.constant 3 : index
    %c0_88 = arith.constant 0 : index
    %c0_89 = arith.constant 0 : index
    %147 = vector.load %arg14[%c3_87, %c0_88, %c0_89] : memref<4x8x8xf32, #tpu.memory_space<vmem>>, vector<1x8x8xf32>
    %148 = vector.shape_cast %147 : vector<1x8x8xf32> to vector<8x8xf32>
    %149 = vector.shape_cast %146 : vector<8x8xf32> to vector<1x8x8xf32>
    tpu.vector_store %arg14[%c3_87, %c0_88, %c0_89], %149 {strides = array<i32>} : memref<4x8x8xf32, #tpu.memory_space<vmem>>, vector<1x8x8xf32>,
    %c3_90 = arith.constant 3 : index
    %c0_91 = arith.constant 0 : index
    %c0_92 = arith.constant 0 : index
    %150 = vector.load %arg12[%c3_90, %c0_91, %c0_92] : memref<4x8x1xf32, #tpu.memory_space<vmem>>, vector<1x8x1xf32>
    %151 = vector.shape_cast %150 : vector<1x8x1xf32> to vector<8x1xf32>
    %152 = vector.shape_cast %124 : vector<8x1xf32> to vector<1x8x1xf32>
    tpu.vector_store %arg12[%c3_90, %c0_91, %c0_92], %152 {strides = array<i32>} : memref<4x8x1xf32, #tpu.memory_space<vmem>>, vector<1x8x1xf32>,
    %c0_i32_93 = arith.constant 0 : i32
    %153 = arith.cmpi eq, %arg2, %c0_i32_93 : i32
    %154 = arith.extui %153 : i1 to i32
    %c0_i32_94 = arith.constant 0 : i32
    %155 = arith.cmpi ne, %154, %c0_i32_94 : i32
    scf.if %155 {
      %cst_95 = arith.constant 0.000000e+00 : f32
      %156 = vector.broadcast %cst_95 : f32 to vector<8x32xf32>
      %c0_96 = arith.constant 0 : index
      %c0_97 = arith.constant 0 : index
      %c0_98 = arith.constant 0 : index
      %157 = vector.load %arg13[%c0_96, %c0_97, %c0_98] : memref<4x8x1xf32, #tpu.memory_space<vmem>>, vector<1x8x1xf32>
      %158 = vector.shape_cast %157 : vector<1x8x1xf32> to vector<8x1xf32>
      %159 = tpu.reciprocal %158 {approx = true} : vector<8x1xf32> -> vector<8x1xf32>
      %c0_99 = arith.constant 0 : index
      %c0_100 = arith.constant 0 : index
      %c0_101 = arith.constant 0 : index
      %160 = vector.load %arg14[%c0_99, %c0_100, %c0_101] : memref<4x8x8xf32, #tpu.memory_space<vmem>>, vector<1x8x8xf32>
      %161 = vector.shape_cast %160 : vector<1x8x8xf32> to vector<8x8xf32>
      %162 = vector.broadcast %159 : vector<8x1xf32> to vector<8x8xf32>
      %163 = arith.mulf %161, %162 : vector<8x8xf32>
      %164 = arith.truncf %163 : vector<8x8xf32> to vector<8x8xbf16>
      %c0_102 = arith.constant 0 : index
      %c0_103 = arith.constant 0 : index
      %165 = vector.load %arg6[%c0_102, %c0_103] : memref<32x32xbf16, #tpu.memory_space<vmem>>, vector<8x32xbf16>
      %cst_104 = arith.constant dense<0.000000e+00> : vector<8x32xf32>
      %166 = tpu.matmul %164, %165, %cst_104 {dimension_numbers = #tpu.dot_dimension_numbers<[1], [0], [0], [1], [0, 0, 1, 1], [], []>} : vector<8x8xbf16>, vector<8x32xbf16>, vector<8x32xf32> -> vector<8x32xf32>
      %167 = arith.addf %156, %166 : vector<8x32xf32>
      %c1_105 = arith.constant 1 : index
      %c0_106 = arith.constant 0 : index
      %c0_107 = arith.constant 0 : index
      %168 = vector.load %arg13[%c1_105, %c0_106, %c0_107] : memref<4x8x1xf32, #tpu.memory_space<vmem>>, vector<1x8x1xf32>
      %169 = vector.shape_cast %168 : vector<1x8x1xf32> to vector<8x1xf32>
      %170 = tpu.reciprocal %169 {approx = true} : vector<8x1xf32> -> vector<8x1xf32>
      %c1_108 = arith.constant 1 : index
      %c0_109 = arith.constant 0 : index
      %c0_110 = arith.constant 0 : index
      %171 = vector.load %arg14[%c1_108, %c0_109, %c0_110] : memref<4x8x8xf32, #tpu.memory_space<vmem>>, vector<1x8x8xf32>
      %172 = vector.shape_cast %171 : vector<1x8x8xf32> to vector<8x8xf32>
      %173 = vector.broadcast %170 : vector<8x1xf32> to vector<8x8xf32>
      %174 = arith.mulf %172, %173 : vector<8x8xf32>
      %175 = arith.truncf %174 : vector<8x8xf32> to vector<8x8xbf16>
      %c8 = arith.constant 8 : index
      %c0_111 = arith.constant 0 : index
      %176 = vector.load %arg6[%c8, %c0_111] : memref<32x32xbf16, #tpu.memory_space<vmem>>, vector<8x32xbf16>
      %cst_112 = arith.constant dense<0.000000e+00> : vector<8x32xf32>
      %177 = tpu.matmul %175, %176, %cst_112 {dimension_numbers = #tpu.dot_dimension_numbers<[1], [0], [0], [1], [0, 0, 1, 1], [], []>} : vector<8x8xbf16>, vector<8x32xbf16>, vector<8x32xf32> -> vector<8x32xf32>
      %178 = arith.addf %167, %177 : vector<8x32xf32>
      %c2_113 = arith.constant 2 : index
      %c0_114 = arith.constant 0 : index
      %c0_115 = arith.constant 0 : index
      %179 = vector.load %arg13[%c2_113, %c0_114, %c0_115] : memref<4x8x1xf32, #tpu.memory_space<vmem>>, vector<1x8x1xf32>
      %180 = vector.shape_cast %179 : vector<1x8x1xf32> to vector<8x1xf32>
      %181 = tpu.reciprocal %180 {approx = true} : vector<8x1xf32> -> vector<8x1xf32>
      %c2_116 = arith.constant 2 : index
      %c0_117 = arith.constant 0 : index
      %c0_118 = arith.constant 0 : index
      %182 = vector.load %arg14[%c2_116, %c0_117, %c0_118] : memref<4x8x8xf32, #tpu.memory_space<vmem>>, vector<1x8x8xf32>
      %183 = vector.shape_cast %182 : vector<1x8x8xf32> to vector<8x8xf32>
      %184 = vector.broadcast %181 : vector<8x1xf32> to vector<8x8xf32>
      %185 = arith.mulf %183, %184 : vector<8x8xf32>
      %186 = arith.truncf %185 : vector<8x8xf32> to vector<8x8xbf16>
      %c16 = arith.constant 16 : index
      %c0_119 = arith.constant 0 : index
      %187 = vector.load %arg6[%c16, %c0_119] : memref<32x32xbf16, #tpu.memory_space<vmem>>, vector<8x32xbf16>
      %cst_120 = arith.constant dense<0.000000e+00> : vector<8x32xf32>
      %188 = tpu.matmul %186, %187, %cst_120 {dimension_numbers = #tpu.dot_dimension_numbers<[1], [0], [0], [1], [0, 0, 1, 1], [], []>} : vector<8x8xbf16>, vector<8x32xbf16>, vector<8x32xf32> -> vector<8x32xf32>
      %189 = arith.addf %178, %188 : vector<8x32xf32>
      %c3_121 = arith.constant 3 : index
      %c0_122 = arith.constant 0 : index
      %c0_123 = arith.constant 0 : index
      %190 = vector.load %arg13[%c3_121, %c0_122, %c0_123] : memref<4x8x1xf32, #tpu.memory_space<vmem>>, vector<1x8x1xf32>
      %191 = vector.shape_cast %190 : vector<1x8x1xf32> to vector<8x1xf32>
      %192 = tpu.reciprocal %191 {approx = true} : vector<8x1xf32> -> vector<8x1xf32>
      %c3_124 = arith.constant 3 : index
      %c0_125 = arith.constant 0 : index
      %c0_126 = arith.constant 0 : index
      %193 = vector.load %arg14[%c3_124, %c0_125, %c0_126] : memref<4x8x8xf32, #tpu.memory_space<vmem>>, vector<1x8x8xf32>
      %194 = vector.shape_cast %193 : vector<1x8x8xf32> to vector<8x8xf32>
      %195 = vector.broadcast %192 : vector<8x1xf32> to vector<8x8xf32>
      %196 = arith.mulf %194, %195 : vector<8x8xf32>
      %197 = arith.truncf %196 : vector<8x8xf32> to vector<8x8xbf16>
      %c24 = arith.constant 24 : index
      %c0_127 = arith.constant 0 : index
      %198 = vector.load %arg6[%c24, %c0_127] : memref<32x32xbf16, #tpu.memory_space<vmem>>, vector<8x32xbf16>
      %cst_128 = arith.constant dense<0.000000e+00> : vector<8x32xf32>
      %199 = tpu.matmul %197, %198, %cst_128 {dimension_numbers = #tpu.dot_dimension_numbers<[1], [0], [0], [1], [0, 0, 1, 1], [], []>} : vector<8x8xbf16>, vector<8x32xbf16>, vector<8x32xf32> -> vector<8x32xf32>
      %200 = arith.addf %189, %199 : vector<8x32xf32>
      %c0_129 = arith.constant 0 : index
      %c0_130 = arith.constant 0 : index
      %c0_131 = arith.constant 0 : index
      %201 = vector.load %arg8[%c0_129, %c0_130, %c0_131] : memref<1x8x32xf32, #tpu.memory_space<vmem>>, vector<1x8x32xf32>
      %202 = vector.shape_cast %201 : vector<1x8x32xf32> to vector<8x32xf32>
      %203 = arith.addf %202, %200 : vector<8x32xf32>
      %c0_132 = arith.constant 0 : index
      %c0_133 = arith.constant 0 : index
      %204 = vector.load %arg7[%c0_132, %c0_133] : memref<1x32xf32, #tpu.memory_space<vmem>>, vector<1x32xf32>
      %205 = vector.broadcast %204 : vector<1x32xf32> to vector<8x32xf32>
      %206 = arith.addf %203, %205 : vector<8x32xf32>
      %cst_134 = arith.constant dense<0.000000e+00> : vector<8xf32>
      %207 = vector.multi_reduction <add>, %206, %cst_134 [1] : vector<8x32xf32> to vector<8xf32>
      %208 = vector.shape_cast %207 : vector<8xf32> to vector<8x1xf32>
      %cst_135 = arith.constant 3.200000e+01 : f32
      %209 = vector.broadcast %cst_135 : f32 to vector<8x1xf32>
      %210 = arith.divf %208, %209 : vector<8x1xf32>
      %211 = vector.broadcast %210 : vector<8x1xf32> to vector<8x32xf32>
      %212 = arith.subf %206, %211 : vector<8x32xf32>
      %213 = arith.mulf %212, %212 : vector<8x32xf32>
      %cst_136 = arith.constant dense<0.000000e+00> : vector<8xf32>
      %214 = vector.multi_reduction <add>, %213, %cst_136 [1] : vector<8x32xf32> to vector<8xf32>
      %215 = vector.shape_cast %214 : vector<8xf32> to vector<8x1xf32>
      %cst_137 = arith.constant 3.200000e+01 : f32
      %216 = vector.broadcast %cst_137 : f32 to vector<8x1xf32>
      %217 = arith.divf %215, %216 : vector<8x1xf32>
      %cst_138 = arith.constant 9.99999974E-6 : f32
      %218 = vector.broadcast %cst_138 : f32 to vector<8x1xf32>
      %219 = arith.addf %217, %218 : vector<8x1xf32>
      %220 = math.rsqrt %219 : vector<8x1xf32>
      %221 = vector.broadcast %220 : vector<8x1xf32> to vector<8x32xf32>
      %222 = arith.mulf %212, %221 : vector<8x32xf32>
      %c0_139 = arith.constant 0 : index
      %c0_140 = arith.constant 0 : index
      %223 = vector.load %arg9[%c0_139, %c0_140] : memref<1x32xf32, #tpu.memory_space<vmem>>, vector<1x32xf32>
      %224 = vector.broadcast %223 : vector<1x32xf32> to vector<8x32xf32>
      %225 = arith.mulf %222, %224 : vector<8x32xf32>
      %c0_141 = arith.constant 0 : index
      %c0_142 = arith.constant 0 : index
      %226 = vector.load %arg10[%c0_141, %c0_142] : memref<1x32xf32, #tpu.memory_space<vmem>>, vector<1x32xf32>
      %227 = vector.broadcast %226 : vector<1x32xf32> to vector<8x32xf32>
      %228 = arith.addf %225, %227 : vector<8x32xf32>
      %c0_143 = arith.constant 0 : index
      %c0_144 = arith.constant 0 : index
      %c0_145 = arith.constant 0 : index
      %229 = vector.load %arg11[%c0_143, %c0_144, %c0_145] : memref<1x8x32xf32, #tpu.memory_space<vmem>>, vector<1x8x32xf32>
      %230 = vector.shape_cast %229 : vector<1x8x32xf32> to vector<8x32xf32>
      %231 = vector.shape_cast %228 : vector<8x32xf32> to vector<1x8x32xf32>
      tpu.vector_store %arg11[%c0_143, %c0_144, %c0_145], %231 {strides = array<i32>} : memref<1x8x32xf32, #tpu.memory_space<vmem>>, vector<1x8x32xf32>,
    } else {
    }
    return
  }
  func.func @transform_0(%arg0: i32, %arg1: i32, %arg2: i32) -> (i32, i32, i32) {
    %c0_i32 = arith.constant 0 : i32
    %c0_i32_0 = arith.constant 0 : i32
    return %arg0, %arg1, %c0_i32 : i32, i32, i32
  }
  func.func @transform_1(%arg0: i32, %arg1: i32, %arg2: i32) -> (i32, i32, i32) {
    %c0_i32 = arith.constant 0 : i32
    %c0_i32_0 = arith.constant 0 : i32
    return %arg0, %arg2, %c0_i32 : i32, i32, i32
  }
  func.func @transform_2(%arg0: i32, %arg1: i32, %arg2: i32) -> (i32, i32, i32) {
    %c0_i32 = arith.constant 0 : i32
    %c0_i32_0 = arith.constant 0 : i32
    return %arg0, %arg2, %c0_i32 : i32, i32, i32
  }
  func.func @transform_3(%arg0: i32, %arg1: i32, %arg2: i32) -> (i32, i32) {
    %c0_i32 = arith.constant 0 : i32
    %c0_i32_0 = arith.constant 0 : i32
    %c0_i32_1 = arith.constant 0 : i32
    return %c0_i32, %c0_i32_0 : i32, i32
  }
  func.func @transform_4(%arg0: i32, %arg1: i32, %arg2: i32) -> (i32, i32) {
    %c0_i32 = arith.constant 0 : i32
    %c0_i32_0 = arith.constant 0 : i32
    %c0_i32_1 = arith.constant 0 : i32
    return %c0_i32, %c0_i32_0 : i32, i32
  }
  func.func @transform_5(%arg0: i32, %arg1: i32, %arg2: i32) -> (i32, i32, i32) {
    %c0_i32 = arith.constant 0 : i32
    %c0_i32_0 = arith.constant 0 : i32
    return %arg0, %arg1, %c0_i32 : i32, i32, i32
  }
  func.func @transform_6(%arg0: i32, %arg1: i32, %arg2: i32) -> (i32, i32) {
    %c0_i32 = arith.constant 0 : i32
    %c0_i32_0 = arith.constant 0 : i32
    %c0_i32_1 = arith.constant 0 : i32
    return %c0_i32, %c0_i32_0 : i32, i32
  }
  func.func @transform_7(%arg0: i32, %arg1: i32, %arg2: i32) -> (i32, i32) {
    %c0_i32 = arith.constant 0 : i32
    %c0_i32_0 = arith.constant 0 : i32
    %c0_i32_1 = arith.constant 0 : i32
    return %c0_i32, %c0_i32_0 : i32, i32
  }
  func.func @transform_8(%arg0: i32, %arg1: i32, %arg2: i32) -> (i32, i32, i32) {
    %c0_i32 = arith.constant 0 : i32
    %c0_i32_0 = arith.constant 0 : i32
    return %arg0, %arg1, %c0_i32 : i32, i32, i32
  }
}

module attributes {stable_mosaic.version = 11 : i64} {
  func.func @_split_proj_kernel(%arg0: i32, %arg1: memref<16x32xf32, #tpu.memory_space<vmem>>, %arg2: memref<32x32xbf16, #tpu.memory_space<vmem>>, %arg3: memref<1x32xf32, #tpu.memory_space<vmem>>, %arg4: memref<16x32xbf16, #tpu.memory_space<vmem>>) attributes {dimension_semantics = [#tpu.dimension_semantics<parallel>], iteration_bounds = array<i64: 1>, scalar_prefetch = 0 : i64, scratch_operands = 0 : i64, tpu.core_type = #tpu.core_type<tc>, window_params = [{transform_indices = @transform_0, window_bounds = array<i64: 16, 32>}, {pipeline_mode = #tpu.pipeline_mode<synchronous>, transform_indices = @transform_1, window_bounds = array<i64: 32, 32>}, {pipeline_mode = #tpu.pipeline_mode<synchronous>, transform_indices = @transform_2, window_bounds = array<i64: 1, 32>}, {transform_indices = @transform_3, window_bounds = array<i64: 16, 32>}]} {
    %c0 = arith.constant 0 : index
    %c0_0 = arith.constant 0 : index
    %0 = vector.load %arg1[%c0, %c0_0] : memref<16x32xf32, #tpu.memory_space<vmem>>, vector<16x32xf32>
    %1 = arith.truncf %0 : vector<16x32xf32> to vector<16x32xbf16>
    %c0_1 = arith.constant 0 : index
    %c0_2 = arith.constant 0 : index
    %2 = vector.load %arg2[%c0_1, %c0_2] : memref<32x32xbf16, #tpu.memory_space<vmem>>, vector<32x32xbf16>
    %cst = arith.constant dense<0.000000e+00> : vector<16x32xf32>
    %3 = tpu.matmul %1, %2, %cst {dimension_numbers = #tpu.dot_dimension_numbers<[1], [0], [0], [1], [0, 0, 1, 1], [], []>} : vector<16x32xbf16>, vector<32x32xbf16>, vector<16x32xf32> -> vector<16x32xf32>
    %c0_3 = arith.constant 0 : index
    %c0_4 = arith.constant 0 : index
    %4 = vector.load %arg3[%c0_3, %c0_4] : memref<1x32xf32, #tpu.memory_space<vmem>>, vector<1x32xf32>
    %5 = vector.broadcast %4 : vector<1x32xf32> to vector<16x32xf32>
    %6 = arith.addf %3, %5 : vector<16x32xf32>
    %7 = arith.truncf %6 : vector<16x32xf32> to vector<16x32xbf16>
    %c0_5 = arith.constant 0 : index
    %c0_6 = arith.constant 0 : index
    %8 = vector.load %arg4[%c0_5, %c0_6] : memref<16x32xbf16, #tpu.memory_space<vmem>>, vector<16x32xbf16>
    tpu.vector_store %arg4[%c0_5, %c0_6], %7 {strides = array<i32>} : memref<16x32xbf16, #tpu.memory_space<vmem>>, vector<16x32xbf16>,
    return
  }
  func.func @transform_0(%arg0: i32) -> (i32, i32) {
    %c0_i32 = arith.constant 0 : i32
    %c0_i32_0 = arith.constant 0 : i32
    return %arg0, %c0_i32 : i32, i32
  }
  func.func @transform_1(%arg0: i32) -> (i32, i32) {
    %c0_i32 = arith.constant 0 : i32
    %c0_i32_0 = arith.constant 0 : i32
    %c0_i32_1 = arith.constant 0 : i32
    return %c0_i32, %c0_i32_0 : i32, i32
  }
  func.func @transform_2(%arg0: i32) -> (i32, i32) {
    %c0_i32 = arith.constant 0 : i32
    %c0_i32_0 = arith.constant 0 : i32
    %c0_i32_1 = arith.constant 0 : i32
    return %c0_i32, %c0_i32_0 : i32, i32
  }
  func.func @transform_3(%arg0: i32) -> (i32, i32) {
    %c0_i32 = arith.constant 0 : i32
    %c0_i32_0 = arith.constant 0 : i32
    return %arg0, %c0_i32 : i32, i32
  }
}

module attributes {stable_mosaic.version = 11 : i64} {
  func.func @_split_proj_kernel(%arg0: i32, %arg1: memref<16x32xf32, #tpu.memory_space<vmem>>, %arg2: memref<32x96xbf16, #tpu.memory_space<vmem>>, %arg3: memref<1x96xf32, #tpu.memory_space<vmem>>, %arg4: memref<16x32xbf16, #tpu.memory_space<vmem>>, %arg5: memref<16x32xbf16, #tpu.memory_space<vmem>>, %arg6: memref<16x32xbf16, #tpu.memory_space<vmem>>) attributes {dimension_semantics = [#tpu.dimension_semantics<parallel>], iteration_bounds = array<i64: 1>, scalar_prefetch = 0 : i64, scratch_operands = 0 : i64, tpu.core_type = #tpu.core_type<tc>, window_params = [{transform_indices = @transform_0, window_bounds = array<i64: 16, 32>}, {pipeline_mode = #tpu.pipeline_mode<synchronous>, transform_indices = @transform_1, window_bounds = array<i64: 32, 96>}, {pipeline_mode = #tpu.pipeline_mode<synchronous>, transform_indices = @transform_2, window_bounds = array<i64: 1, 96>}, {transform_indices = @transform_3, window_bounds = array<i64: 16, 32>}, {transform_indices = @transform_4, window_bounds = array<i64: 16, 32>}, {transform_indices = @transform_5, window_bounds = array<i64: 16, 32>}]} {
    %c0 = arith.constant 0 : index
    %c0_0 = arith.constant 0 : index
    %0 = vector.load %arg1[%c0, %c0_0] : memref<16x32xf32, #tpu.memory_space<vmem>>, vector<16x32xf32>
    %1 = arith.truncf %0 : vector<16x32xf32> to vector<16x32xbf16>
    %c0_1 = arith.constant 0 : index
    %c0_2 = arith.constant 0 : index
    %2 = vector.load %arg2[%c0_1, %c0_2] : memref<32x96xbf16, #tpu.memory_space<vmem>>, vector<32x32xbf16>
    %cst = arith.constant dense<0.000000e+00> : vector<16x32xf32>
    %3 = tpu.matmul %1, %2, %cst {dimension_numbers = #tpu.dot_dimension_numbers<[1], [0], [0], [1], [0, 0, 1, 1], [], []>} : vector<16x32xbf16>, vector<32x32xbf16>, vector<16x32xf32> -> vector<16x32xf32>
    %c0_3 = arith.constant 0 : index
    %c0_4 = arith.constant 0 : index
    %4 = vector.load %arg3[%c0_3, %c0_4] : memref<1x96xf32, #tpu.memory_space<vmem>>, vector<1x32xf32>
    %5 = vector.broadcast %4 : vector<1x32xf32> to vector<16x32xf32>
    %6 = arith.addf %3, %5 : vector<16x32xf32>
    %7 = arith.truncf %6 : vector<16x32xf32> to vector<16x32xbf16>
    %c0_5 = arith.constant 0 : index
    %c0_6 = arith.constant 0 : index
    %8 = vector.load %arg4[%c0_5, %c0_6] : memref<16x32xbf16, #tpu.memory_space<vmem>>, vector<16x32xbf16>
    tpu.vector_store %arg4[%c0_5, %c0_6], %7 {strides = array<i32>} : memref<16x32xbf16, #tpu.memory_space<vmem>>, vector<16x32xbf16>,
    %c0_7 = arith.constant 0 : index
    %c32 = arith.constant 32 : index
    %9 = vector.load %arg2[%c0_7, %c32] : memref<32x96xbf16, #tpu.memory_space<vmem>>, vector<32x32xbf16>
    %cst_8 = arith.constant dense<0.000000e+00> : vector<16x32xf32>
    %10 = tpu.matmul %1, %9, %cst_8 {dimension_numbers = #tpu.dot_dimension_numbers<[1], [0], [0], [1], [0, 0, 1, 1], [], []>} : vector<16x32xbf16>, vector<32x32xbf16>, vector<16x32xf32> -> vector<16x32xf32>
    %c0_9 = arith.constant 0 : index
    %c32_10 = arith.constant 32 : index
    %11 = vector.load %arg3[%c0_9, %c32_10] : memref<1x96xf32, #tpu.memory_space<vmem>>, vector<1x32xf32>
    %12 = vector.broadcast %11 : vector<1x32xf32> to vector<16x32xf32>
    %13 = arith.addf %10, %12 : vector<16x32xf32>
    %14 = arith.truncf %13 : vector<16x32xf32> to vector<16x32xbf16>
    %c0_11 = arith.constant 0 : index
    %c0_12 = arith.constant 0 : index
    %15 = vector.load %arg5[%c0_11, %c0_12] : memref<16x32xbf16, #tpu.memory_space<vmem>>, vector<16x32xbf16>
    tpu.vector_store %arg5[%c0_11, %c0_12], %14 {strides = array<i32>} : memref<16x32xbf16, #tpu.memory_space<vmem>>, vector<16x32xbf16>,
    %c0_13 = arith.constant 0 : index
    %c64 = arith.constant 64 : index
    %16 = vector.load %arg2[%c0_13, %c64] : memref<32x96xbf16, #tpu.memory_space<vmem>>, vector<32x32xbf16>
    %cst_14 = arith.constant dense<0.000000e+00> : vector<16x32xf32>
    %17 = tpu.matmul %1, %16, %cst_14 {dimension_numbers = #tpu.dot_dimension_numbers<[1], [0], [0], [1], [0, 0, 1, 1], [], []>} : vector<16x32xbf16>, vector<32x32xbf16>, vector<16x32xf32> -> vector<16x32xf32>
    %c0_15 = arith.constant 0 : index
    %c64_16 = arith.constant 64 : index
    %18 = vector.load %arg3[%c0_15, %c64_16] : memref<1x96xf32, #tpu.memory_space<vmem>>, vector<1x32xf32>
    %19 = vector.broadcast %18 : vector<1x32xf32> to vector<16x32xf32>
    %20 = arith.addf %17, %19 : vector<16x32xf32>
    %21 = arith.truncf %20 : vector<16x32xf32> to vector<16x32xbf16>
    %c0_17 = arith.constant 0 : index
    %c0_18 = arith.constant 0 : index
    %22 = vector.load %arg6[%c0_17, %c0_18] : memref<16x32xbf16, #tpu.memory_space<vmem>>, vector<16x32xbf16>
    tpu.vector_store %arg6[%c0_17, %c0_18], %21 {strides = array<i32>} : memref<16x32xbf16, #tpu.memory_space<vmem>>, vector<16x32xbf16>,
    return
  }
  func.func @transform_0(%arg0: i32) -> (i32, i32) {
    %c0_i32 = arith.constant 0 : i32
    %c0_i32_0 = arith.constant 0 : i32
    return %arg0, %c0_i32 : i32, i32
  }
  func.func @transform_1(%arg0: i32) -> (i32, i32) {
    %c0_i32 = arith.constant 0 : i32
    %c0_i32_0 = arith.constant 0 : i32
    %c0_i32_1 = arith.constant 0 : i32
    return %c0_i32, %c0_i32_0 : i32, i32
  }
  func.func @transform_2(%arg0: i32) -> (i32, i32) {
    %c0_i32 = arith.constant 0 : i32
    %c0_i32_0 = arith.constant 0 : i32
    %c0_i32_1 = arith.constant 0 : i32
    return %c0_i32, %c0_i32_0 : i32, i32
  }
  func.func @transform_3(%arg0: i32) -> (i32, i32) {
    %c0_i32 = arith.constant 0 : i32
    %c0_i32_0 = arith.constant 0 : i32
    return %arg0, %c0_i32 : i32, i32
  }
  func.func @transform_4(%arg0: i32) -> (i32, i32) {
    %c0_i32 = arith.constant 0 : i32
    %c0_i32_0 = arith.constant 0 : i32
    return %arg0, %c0_i32 : i32, i32
  }
  func.func @transform_5(%arg0: i32) -> (i32, i32) {
    %c0_i32 = arith.constant 0 : i32
    %c0_i32_0 = arith.constant 0 : i32
    return %arg0, %c0_i32 : i32, i32
  }
}

module attributes {stable_mosaic.version = 11 : i64} {
  func.func @_ffn_add_ln_kernel(%arg0: i32, %arg1: memref<16x32xf32, #tpu.memory_space<vmem>>, %arg2: memref<32x64xbf16, #tpu.memory_space<vmem>>, %arg3: memref<1x64xf32, #tpu.memory_space<vmem>>, %arg4: memref<64x32xbf16, #tpu.memory_space<vmem>>, %arg5: memref<1x32xf32, #tpu.memory_space<vmem>>, %arg6: memref<1x32xf32, #tpu.memory_space<vmem>>, %arg7: memref<1x32xf32, #tpu.memory_space<vmem>>, %arg8: memref<16x32xf32, #tpu.memory_space<vmem>>) attributes {dimension_semantics = [#tpu.dimension_semantics<parallel>], iteration_bounds = array<i64: 1>, scalar_prefetch = 0 : i64, scratch_operands = 0 : i64, tpu.core_type = #tpu.core_type<tc>, window_params = [{transform_indices = @transform_0, window_bounds = array<i64: 16, 32>}, {pipeline_mode = #tpu.pipeline_mode<synchronous>, transform_indices = @transform_1, window_bounds = array<i64: 32, 64>}, {pipeline_mode = #tpu.pipeline_mode<synchronous>, transform_indices = @transform_2, window_bounds = array<i64: 1, 64>}, {pipeline_mode = #tpu.pipeline_mode<synchronous>, transform_indices = @transform_3, window_bounds = array<i64: 64, 32>}, {pipeline_mode = #tpu.pipeline_mode<synchronous>, transform_indices = @transform_4, window_bounds = array<i64: 1, 32>}, {pipeline_mode = #tpu.pipeline_mode<synchronous>, transform_indices = @transform_5, window_bounds = array<i64: 1, 32>}, {pipeline_mode = #tpu.pipeline_mode<synchronous>, transform_indices = @transform_6, window_bounds = array<i64: 1, 32>}, {transform_indices = @transform_7, window_bounds = array<i64: 16, 32>}]} {
    %c0 = arith.constant 0 : index
    %c0_0 = arith.constant 0 : index
    %0 = vector.load %arg1[%c0, %c0_0] : memref<16x32xf32, #tpu.memory_space<vmem>>, vector<16x32xf32>
    %1 = arith.truncf %0 : vector<16x32xf32> to vector<16x32xbf16>
    %c0_1 = arith.constant 0 : index
    %c0_2 = arith.constant 0 : index
    %2 = vector.load %arg2[%c0_1, %c0_2] : memref<32x64xbf16, #tpu.memory_space<vmem>>, vector<32x64xbf16>
    %cst = arith.constant dense<0.000000e+00> : vector<16x64xf32>
    %3 = tpu.matmul %1, %2, %cst {dimension_numbers = #tpu.dot_dimension_numbers<[1], [0], [0], [1], [0, 0, 1, 1], [], []>} : vector<16x32xbf16>, vector<32x64xbf16>, vector<16x64xf32> -> vector<16x64xf32>
    %c0_3 = arith.constant 0 : index
    %c0_4 = arith.constant 0 : index
    %4 = vector.load %arg3[%c0_3, %c0_4] : memref<1x64xf32, #tpu.memory_space<vmem>>, vector<1x64xf32>
    %5 = vector.broadcast %4 : vector<1x64xf32> to vector<16x64xf32>
    %6 = arith.addf %3, %5 : vector<16x64xf32>
    %cst_5 = arith.constant 0.000000e+00 : f32
    %7 = vector.broadcast %cst_5 : f32 to vector<16x64xf32>
    %8 = arith.maximumf %6, %7 : vector<16x64xf32>
    %9 = arith.truncf %8 : vector<16x64xf32> to vector<16x64xbf16>
    %c0_6 = arith.constant 0 : index
    %c0_7 = arith.constant 0 : index
    %10 = vector.load %arg4[%c0_6, %c0_7] : memref<64x32xbf16, #tpu.memory_space<vmem>>, vector<64x32xbf16>
    %cst_8 = arith.constant dense<0.000000e+00> : vector<16x32xf32>
    %11 = tpu.matmul %9, %10, %cst_8 {dimension_numbers = #tpu.dot_dimension_numbers<[1], [0], [0], [1], [0, 0, 1, 1], [], []>} : vector<16x64xbf16>, vector<64x32xbf16>, vector<16x32xf32> -> vector<16x32xf32>
    %c0_9 = arith.constant 0 : index
    %c0_10 = arith.constant 0 : index
    %12 = vector.load %arg5[%c0_9, %c0_10] : memref<1x32xf32, #tpu.memory_space<vmem>>, vector<1x32xf32>
    %13 = vector.broadcast %12 : vector<1x32xf32> to vector<16x32xf32>
    %14 = arith.addf %11, %13 : vector<16x32xf32>
    %15 = arith.addf %0, %14 : vector<16x32xf32>
    %cst_11 = arith.constant dense<0.000000e+00> : vector<16xf32>
    %16 = vector.multi_reduction <add>, %15, %cst_11 [1] : vector<16x32xf32> to vector<16xf32>
    %17 = vector.shape_cast %16 : vector<16xf32> to vector<16x1xf32>
    %cst_12 = arith.constant 3.200000e+01 : f32
    %18 = vector.broadcast %cst_12 : f32 to vector<16x1xf32>
    %19 = arith.divf %17, %18 : vector<16x1xf32>
    %20 = vector.broadcast %19 : vector<16x1xf32> to vector<16x32xf32>
    %21 = arith.subf %15, %20 : vector<16x32xf32>
    %22 = arith.mulf %21, %21 : vector<16x32xf32>
    %cst_13 = arith.constant dense<0.000000e+00> : vector<16xf32>
    %23 = vector.multi_reduction <add>, %22, %cst_13 [1] : vector<16x32xf32> to vector<16xf32>
    %24 = vector.shape_cast %23 : vector<16xf32> to vector<16x1xf32>
    %cst_14 = arith.constant 3.200000e+01 : f32
    %25 = vector.broadcast %cst_14 : f32 to vector<16x1xf32>
    %26 = arith.divf %24, %25 : vector<16x1xf32>
    %cst_15 = arith.constant 9.99999974E-6 : f32
    %27 = vector.broadcast %cst_15 : f32 to vector<16x1xf32>
    %28 = arith.addf %26, %27 : vector<16x1xf32>
    %29 = math.rsqrt %28 : vector<16x1xf32>
    %30 = vector.broadcast %29 : vector<16x1xf32> to vector<16x32xf32>
    %31 = arith.mulf %21, %30 : vector<16x32xf32>
    %c0_16 = arith.constant 0 : index
    %c0_17 = arith.constant 0 : index
    %32 = vector.load %arg6[%c0_16, %c0_17] : memref<1x32xf32, #tpu.memory_space<vmem>>, vector<1x32xf32>
    %33 = vector.broadcast %32 : vector<1x32xf32> to vector<16x32xf32>
    %34 = arith.mulf %31, %33 : vector<16x32xf32>
    %c0_18 = arith.constant 0 : index
    %c0_19 = arith.constant 0 : index
    %35 = vector.load %arg7[%c0_18, %c0_19] : memref<1x32xf32, #tpu.memory_space<vmem>>, vector<1x32xf32>
    %36 = vector.broadcast %35 : vector<1x32xf32> to vector<16x32xf32>
    %37 = arith.addf %34, %36 : vector<16x32xf32>
    %c0_20 = arith.constant 0 : index
    %c0_21 = arith.constant 0 : index
    %38 = vector.load %arg8[%c0_20, %c0_21] : memref<16x32xf32, #tpu.memory_space<vmem>>, vector<16x32xf32>
    tpu.vector_store %arg8[%c0_20, %c0_21], %37 {strides = array<i32>} : memref<16x32xf32, #tpu.memory_space<vmem>>, vector<16x32xf32>,
    return
  }
  func.func @transform_0(%arg0: i32) -> (i32, i32) {
    %c0_i32 = arith.constant 0 : i32
    %c0_i32_0 = arith.constant 0 : i32
    return %arg0, %c0_i32 : i32, i32
  }
  func.func @transform_1(%arg0: i32) -> (i32, i32) {
    %c0_i32 = arith.constant 0 : i32
    %c0_i32_0 = arith.constant 0 : i32
    %c0_i32_1 = arith.constant 0 : i32
    return %c0_i32, %c0_i32_0 : i32, i32
  }
  func.func @transform_2(%arg0: i32) -> (i32, i32) {
    %c0_i32 = arith.constant 0 : i32
    %c0_i32_0 = arith.constant 0 : i32
    %c0_i32_1 = arith.constant 0 : i32
    return %c0_i32, %c0_i32_0 : i32, i32
  }
  func.func @transform_3(%arg0: i32) -> (i32, i32) {
    %c0_i32 = arith.constant 0 : i32
    %c0_i32_0 = arith.constant 0 : i32
    %c0_i32_1 = arith.constant 0 : i32
    return %c0_i32, %c0_i32_0 : i32, i32
  }
  func.func @transform_4(%arg0: i32) -> (i32, i32) {
    %c0_i32 = arith.constant 0 : i32
    %c0_i32_0 = arith.constant 0 : i32
    %c0_i32_1 = arith.constant 0 : i32
    return %c0_i32, %c0_i32_0 : i32, i32
  }
  func.func @transform_5(%arg0: i32) -> (i32, i32) {
    %c0_i32 = arith.constant 0 : i32
    %c0_i32_0 = arith.constant 0 : i32
    %c0_i32_1 = arith.constant 0 : i32
    return %c0_i32, %c0_i32_0 : i32, i32
  }
  func.func @transform_6(%arg0: i32) -> (i32, i32) {
    %c0_i32 = arith.constant 0 : i32
    %c0_i32_0 = arith.constant 0 : i32
    %c0_i32_1 = arith.constant 0 : i32
    return %c0_i32, %c0_i32_0 : i32, i32
  }
  func.func @transform_7(%arg0: i32) -> (i32, i32) {
    %c0_i32 = arith.constant 0 : i32
    %c0_i32_0 = arith.constant 0 : i32
    return %arg0, %c0_i32 : i32, i32
  }
}

</mosaic_0001>

<bundles_post_ra>
// kernel: decoder_layer.9
= control target key start
LH: loop header
LB: loop body
LE: loop exit
PB: predicated region body
PF: predicated region fallthrough
CT: control target
= control target key end

     0   :  { %10 = vsyncpa [#allocation3], 0  ;;  %s274_s15 = smov [#allocation2]   ;;  %s348_s0 = inlined_call_operand.hbm [shape: f32[16,32], index: 0, kind: input, shape index: {}]   ;;  %s349_s1 = inlined_call_operand.vmem [shape: bf16[32,64], index: 1, kind: input, shape index: {}]   ;;  %s350_s2 = inlined_call_operand.vmem [shape: f32[1,64], index: 2, kind: input, shape index: {}]   ;;  %s351_s3 = inlined_call_operand.vmem [shape: bf16[16,32], index: 3, kind: output, shape index: {0}]   ;;  %s352_s4 = inlined_call_operand.vmem [shape: bf16[16,32], index: 4, kind: output, shape index: {1}]  }
   0x1   :  { %s16_s16 = sshll.u32 %s274_s15, 4  ;;  %s250_s19 = scalar_lea.hbm %s348_s0, 256  ;;  %s17_s16 = int_to_ptr.vmem [resolvable:$true] %s16_s16 }
   0x2   :  { %p251_p0 = scmp.ne.s32.totalorder %s348_s0, %s250_s19  ;;  %p254_p1 = scmp.lt.u32.totalorder %s250_s19, %s348_s0 }
   0x4   :  { %p256_p2 = pnand %p254_p1, %p251_p0 }
   0x6   :  { %259 = shalt.err (!%p256_p2)
}
   0x7   :  { %s260_s24 = scalar_lea.vmem %s17_s16, 256  ;;  %p265_p4 = scmp.lt.s32.totalorder %s17_s16, %s17_s16 }
   0x8   :  { %p261_p3 = scmp.ne.s32.totalorder %s17_s16, %s260_s24  ;;  %p266_p5 = scmp.lt.s32.totalorder %s260_s24, %s260_s24 }
   0xa   :  { %p267_p6 = por %p266_p5, %p265_p4 }
   0xc   :  { %p268_p7 = pnand %p267_p6, %p261_p3 }
   0xe   :  { %271 = shalt.err (!%p268_p7)
}
   0xf   :  { %s275_s25 = smov 128   ;;  %s276_s26 = smov 8  }
  0x10   :  { %22 = dma.hbm_to_vmem [thread:$0]  %s348_s0, 256, %s17_s16, [#allocation3], %s275_s25, %s275_s25, %s276_s26  }
  0x11   :  { %272 = dma.done.wait [#allocation3], 256  }
  0x12   :  { %273 = vsyncadd [#allocation3], 4294967040  ;;  %v277_v0 = vmov 0.0   ;;  %vm278_vm0 = vmmov 0   ;;  %v246_v1 = vld [vmem:[%s349_s1] sm:$0xff]   ;;  %v247_v2 = vld [vmem:[%s349_s1 + $0x8] sm:$0xff]  }
  0x13   :  { %224 = vmatprep.subr.bf16.mxu0 %v277_v0  ;;  %232 = vmatprep.subr.bf16.mxu1 %v277_v0  ;;  %s279_s7 = smov 96   ;;  %v248_v3 = vld [vmem:[%s349_s1] sm:$0xff]   ;;  %v249_v4 = vld [vmem:[%s349_s1 + $0x8] sm:$0xff]   ;;  %vm57_vm1 = vcmask 261120   ;;  %vm110_vm2 = vcmask 257024  }
  0x14   :  { %228 = vmatprep.mubr.msk.bf16.mxu0 %vm278_vm0, %v277_v0  ;;  %236 = vmatprep.mubr.msk.bf16.mxu1 %vm278_vm0, %v277_v0  ;;  %v31_v5 = vld [vmem:[#allocation2] sm:$0xff]  ;;  %v32_v6 = vld [vmem:[#allocation2 + $0x8] sm:$0xff] }
  0x15   :  { %133 = vrot.lane.b32.xlu0 %v246_v1, %s279_s7  ;;  %225 = vmatpush3.bf16.msra.mxu0 %v248_v3  ;;  %v208_v7 = vld [vmem:[%s350_s2] ss:$0 sm:$0xff]  ;;  %v33_v8 = vpack.c.bf16 %v32_v6, %v31_v5 }
  0x16   :  { %226 = vmatprep.subr.bf16.mxu0 %v277_v0  ;;  %139 = vrot.lane.b32.xlu1 %v208_v7, %s279_s7 }
  0x19   :  { %135 = vrot.lane.b32.xlu0 %v247_v2, %s279_s7  ;;  %227 = vmatpush3.bf16.msra.mxu0 %v249_v4 }
  0x1c   :  { %229 = vmatmul.mubr.msk.bf16.vlgmr.msra.gmra.mrb[0].mxu0 %vm57_vm1, %v33_v8 }
  0x87   :  { %v134_v9 = vpop.permute.xlu0 %133 }
  0x88   :  { %233 = vmatpush3.bf16.msra.mxu1 %v134_v9  ;;  %v140_v19 = vpop.permute.xlu1 %139 }
  0x89   :  { %234 = vmatprep.subr.bf16.mxu1 %v277_v0 }
  0x8b   :  { %v136_v10 = vpop.permute.xlu0 %135 }
  0x8c   :  { %235 = vmatpush3.bf16.msra.mxu1 %v136_v10 }
  0x8f   :  { %237 = vmatmul.mubr.msk.bf16.vlgmr.msra.gmra.mrb[0].mxu1 %vm57_vm1, %v33_v8 }
  0xef   :  { %v95_v11 = vpop.f32.mrb[0].mxu0 }
  0xf0   :  { %v96_v12 = vadd.f32 %v208_v7, %v95_v11  ;;  %v230_v13 = vpop.f32.mrb[1].mxu0 }
  0xf1   :  { %v98_v14 = vpop.f32.mrb[2].mxu0 }
  0xf2   :  { %v214_v15 = vpack.c.bf16 %v96_v12, %v96_v12  ;;  %v99_v16 = vadd.f32 %v208_v7, %v98_v14  ;;  %v231_v17 = vpop.f32.mrb[3].mxu0 }
  0xf4   :  { %111 = vst.msk [vmem:[%s351_s3] sm:$0xf] %vm110_vm2, %v214_v15  ;;  %v215_v18 = vpack.c.bf16 %v99_v16, %v99_v16 }
  0xf6   :  { %112 = vst.msk [vmem:[%s351_s3 + $0x4] sm:$0xf] %vm110_vm2, %v215_v18 }
 0x162   :  { %v176_v20 = vpop.f32.mrb[0].mxu1 }
 0x163   :  { %v177_v21 = vadd.f32 %v176_v20, %v140_v19  ;;  %v238_v22 = vpop.f32.mrb[1].mxu1 }
 0x164   :  { %v179_v23 = vpop.f32.mrb[2].mxu1 }
 0x165   :  { %v216_v24 = vpack.c.bf16 %v177_v21, %v177_v21  ;;  %v180_v25 = vadd.f32 %v179_v23, %v140_v19  ;;  %v239_v26 = vpop.f32.mrb[3].mxu1 }
 0x167   :  { %191 = vst.msk [vmem:[%s352_s4] sm:$0xf] %vm110_vm2, %v216_v24  ;;  %v217_v27 = vpack.c.bf16 %v180_v25, %v180_v25 }
 0x169   :  { %192 = vst.msk [vmem:[%s352_s4 + $0x4] sm:$0xf] %vm110_vm2, %v217_v27 }
 0x16a   :  { %201 = vsyncpa [#allocation3], 1 }

// kernel: decoder_layer.8
= control target key start
LH: loop header
LB: loop body
LE: loop exit
PB: predicated region body
PF: predicated region fallthrough
CT: control target
= control target key end

     0   :  { %v124_v0 = vmov 0.0   ;;  %vm125_vm0 = vmmov 0   ;;  %vm41_vm1 = vcmask 261120   ;;  %vm94_vm2 = vcmask 257024   ;;  %s167_s1 = inlined_call_operand.vmem [shape: bf16[32,32], index: 1, kind: input, shape index: {}]   ;;  %s168_s0 = inlined_call_operand.vmem [shape: f32[16,32], index: 0, kind: input, shape index: {}]   ;;  %s169_s2 = inlined_call_operand.vmem [shape: f32[1,32], index: 2, kind: input, shape index: {}]   ;;  %s170_s3 = inlined_call_operand.vmem [shape: bf16[16,32], index: 3, kind: output, shape index: {}]  }
   0x1   :  { %112 = vmatprep.subr.bf16.mxu0 %v124_v0  ;;  %v122_v1 = vld [vmem:[%s167_s1] sm:$0xff]   ;;  %116 = vmatprep.mubr.msk.bf16.mxu0 %vm125_vm0, %v124_v0  ;;  %v123_v2 = vld [vmem:[%s167_s1 + $0x8] sm:$0xff]  }
   0x2   :  { %113 = vmatpush3.bf16.msra.mxu0 %v122_v1  ;;  %v15_v3 = vld [vmem:[%s168_s0] sm:$0xff]  ;;  %v16_v4 = vld [vmem:[%s168_s0 + $0x8] sm:$0xff] }
   0x3   :  { %114 = vmatprep.subr.bf16.mxu0 %v124_v0  ;;  %v17_v5 = vpack.c.bf16 %v16_v4, %v15_v3  ;;  %v101_v6 = vld [vmem:[%s169_s2] ss:$0 sm:$0xff] }
   0x6   :  { %115 = vmatpush3.bf16.msra.mxu0 %v123_v2 }
   0x9   :  { %117 = vmatmul.mubr.msk.bf16.vlgmr.msra.gmra.mrb[0].mxu0 %vm41_vm1, %v17_v5 }
  0xdc   :  { %v79_v7 = vpop.f32.mrb[0].mxu0 }
  0xdd   :  { %v80_v8 = vadd.f32 %v101_v6, %v79_v7  ;;  %v118_v9 = vpop.f32.mrb[1].mxu0 }
  0xde   :  { %v82_v10 = vpop.f32.mrb[2].mxu0 }
  0xdf   :  { %v107_v11 = vpack.c.bf16 %v80_v8, %v80_v8  ;;  %v83_v12 = vadd.f32 %v101_v6, %v82_v10  ;;  %v119_v13 = vpop.f32.mrb[3].mxu0 }
  0xe1   :  { %95 = vst.msk [vmem:[%s170_s3] sm:$0xf] %vm94_vm2, %v107_v11  ;;  %v108_v14 = vpack.c.bf16 %v83_v12, %v83_v12 }
  0xe3   :  { %96 = vst.msk [vmem:[%s170_s3 + $0x4] sm:$0xf] %vm94_vm2, %v108_v14 }

// kernel: decoder_layer.6
= control target key start
LH: loop header
LB: loop body
LE: loop exit
PB: predicated region body
PF: predicated region fallthrough
CT: control target
= control target key end

     0   :  { %v339_v1 = vmov 0.0   ;;  %vm340_vm0 = vmmov 0   ;;  %s341_s22 = smov 96   ;;  %s342_s29 = smov 64   ;;  %vm44_vm1 = vcmask 261120   ;;  %vm97_vm2 = vcmask 257024   ;;  %s430_s1 = inlined_call_operand.vmem [shape: bf16[32,96], index: 1, kind: input, shape index: {}]   ;;  %s431_s0 = inlined_call_operand.vmem [shape: f32[16,32], index: 0, kind: input, shape index: {}]   ;;  %s432_s2 = inlined_call_operand.vmem [shape: f32[1,96], index: 2, kind: input, shape index: {}]   ;;  %s433_s3 = inlined_call_operand.vmem [shape: bf16[16,32], index: 3, kind: output, shape index: {0}]   ;;  %s434_s4 = inlined_call_operand.vmem [shape: bf16[16,32], index: 4, kind: output, shape index: {1}]   ;;  %s435_s5 = inlined_call_operand.vmem [shape: bf16[16,32], index: 5, kind: output, shape index: {2}]  }
   0x1   :  { %v333_v0 = vld [vmem:[%s430_s1] sm:$0xff]   ;;  %305 = vmatprep.subr.bf16.mxu0 %v339_v1  ;;  %313 = vmatprep.subr.bf16.mxu1 %v339_v1  ;;  %v334_v2 = vld [vmem:[%s430_s1 + $0x8] sm:$0xff]  }
   0x2   :  { %309 = vmatprep.mubr.msk.bf16.mxu0 %vm340_vm0, %v339_v1  ;;  %317 = vmatprep.mubr.msk.bf16.mxu1 %vm340_vm0, %v339_v1  ;;  %v335_v3 = vld [vmem:[%s430_s1] sm:$0xff]   ;;  %v336_v4 = vld [vmem:[%s430_s1 + $0x8] sm:$0xff]  }
   0x3   :  { %120 = vrot.lane.b32.xlu0 %v333_v0, %s341_s22  ;;  %122 = vrot.lane.b32.xlu1 %v334_v2, %s341_s22  ;;  %v337_v5 = vld [vmem:[%s430_s1] sm:$0xff]   ;;  %v338_v6 = vld [vmem:[%s430_s1 + $0x8] sm:$0xff]  }
   0x4   :  { %306 = vmatpush3.bf16.msra.mxu0 %v337_v5  ;;  %v18_v7 = vld [vmem:[%s431_s0] sm:$0xff]  ;;  %v19_v8 = vld [vmem:[%s431_s0 + $0x8] sm:$0xff] }
   0x5   :  { %307 = vmatprep.subr.bf16.mxu0 %v339_v1  ;;  %v284_v9 = vld [vmem:[%s432_s2] ss:$0 sm:$0xff]  ;;  %v20_v10 = vpack.c.bf16 %v19_v8, %v18_v7 }
   0x7   :  { %200 = vrot.lane.b32.xlu0 %v335_v3, %s342_s29  ;;  %202 = vrot.lane.b32.xlu1 %v336_v4, %s342_s29 }
   0x8   :  { %308 = vmatpush3.bf16.msra.mxu0 %v338_v6 }
   0x9   :  { %321 = vmatprep.subr.bf16.mxu0 %v339_v1 }
   0xb   :  { %126 = vrot.lane.b32.xlu0 %v284_v9, %s341_s22  ;;  %206 = vrot.lane.b32.xlu1 %v284_v9, %s342_s29 }
   0xc   :  { %310 = vmatmul.mubr.msk.bf16.vlgmr.msra.gmra.mrb[0].mxu0 %vm44_vm1, %v20_v10 }
   0xd   :  { %325 = vmatprep.mubr.msk.bf16.mxu0 %vm340_vm0, %v339_v1 }
  0x75   :  { %v121_v11 = vpop.permute.xlu0 %120  ;;  %v123_v12 = vpop.permute.xlu1 %122 }
  0x76   :  { %314 = vmatpush3.bf16.msra.mxu1 %v121_v11 }
  0x77   :  { %315 = vmatprep.subr.bf16.mxu1 %v339_v1 }
  0x79   :  { %v201_v13 = vpop.permute.xlu0 %200  ;;  %v203_v14 = vpop.permute.xlu1 %202 }
  0x7a   :  { %316 = vmatpush3.bf16.msra.mxu1 %v123_v12  ;;  %322 = vmatpush3.bf16.msra.mxu0 %v201_v13 }
  0x7b   :  { %323 = vmatprep.subr.bf16.mxu0 %v339_v1 }
  0x7d   :  { %318 = vmatmul.mubr.msk.bf16.vlgmr.msra.gmra.mrb[0].mxu1 %vm44_vm1, %v20_v10  ;;  %v127_v23 = vpop.permute.xlu0 %126  ;;  %v207_v28 = vpop.permute.xlu1 %206 }
  0x7e   :  { %324 = vmatpush3.bf16.msra.mxu0 %v203_v14 }
  0x81   :  { %326 = vmatmul.mubr.msk.bf16.vlgmr.msra.gmra.mrb[4].mxu0 %vm44_vm1, %v20_v10 }
  0xdf   :  { %v82_v15 = vpop.f32.mrb[0].mxu0 }
  0xe0   :  { %v83_v16 = vadd.f32 %v284_v9, %v82_v15  ;;  %v311_v17 = vpop.f32.mrb[1].mxu0 }
  0xe1   :  { %v85_v18 = vpop.f32.mrb[2].mxu0 }
  0xe2   :  { %v290_v19 = vpack.c.bf16 %v83_v16, %v83_v16  ;;  %v86_v20 = vadd.f32 %v284_v9, %v85_v18  ;;  %v312_v21 = vpop.f32.mrb[3].mxu0 }
  0xe4   :  { %98 = vst.msk [vmem:[%s433_s3] sm:$0xf] %vm97_vm2, %v290_v19  ;;  %v291_v22 = vpack.c.bf16 %v86_v20, %v86_v20 }
  0xe6   :  { %99 = vst.msk [vmem:[%s433_s3 + $0x4] sm:$0xf] %vm97_vm2, %v291_v22 }
 0x150   :  { %v163_v24 = vpop.f32.mrb[0].mxu1 }
 0x151   :  { %v319_v25 = vpop.f32.mrb[1].mxu1  ;;  %v164_v26 = vadd.f32 %v163_v24, %v127_v23 }
 0x152   :  { %v166_v27 = vpop.f32.mrb[2].mxu1 }
 0x153   :  { %v167_v29 = vadd.f32 %v166_v27, %v127_v23  ;;  %v292_v30 = vpack.c.bf16 %v164_v26, %v164_v26  ;;  %v320_v31 = vpop.f32.mrb[3].mxu1 }
 0x154   :  { %v243_v32 = vpop.f32.mrb[4].mxu0 }
 0x155   :  { %v244_v33 = vadd.f32 %v243_v32, %v207_v28  ;;  %v293_v34 = vpack.c.bf16 %v167_v29, %v167_v29  ;;  %178 = vst.msk [vmem:[%s434_s4] sm:$0xf] %vm97_vm2, %v292_v30  ;;  %v327_v35 = vpop.f32.mrb[5].mxu0 }
 0x156   :  { %v246_v36 = vpop.f32.mrb[6].mxu0 }
 0x157   :  { %v294_v37 = vpack.c.bf16 %v244_v33, %v244_v33  ;;  %179 = vst.msk [vmem:[%s434_s4 + $0x4] sm:$0xf] %vm97_vm2, %v293_v34  ;;  %v247_v38 = vadd.f32 %v246_v36, %v207_v28  ;;  %v328_v39 = vpop.f32.mrb[7].mxu0 }
 0x159   :  { %258 = vst.msk [vmem:[%s435_s5] sm:$0xf] %vm97_vm2, %v294_v37  ;;  %v295_v40 = vpack.c.bf16 %v247_v38, %v247_v38 }
 0x15b   :  { %259 = vst.msk [vmem:[%s435_s5 + $0x4] sm:$0xf] %vm97_vm2, %v295_v40 }

// kernel: decoder_layer.7
= control target key start
LH: loop header
LB: loop body
LE: loop exit
PB: predicated region body
PF: predicated region fallthrough
CT: control target
= control target key end

     0   :  { %s1648_s27 = smov 0   ;;  %s1650_s28 = smov 0   ;;  %s1861_s0 = inlined_call_operand.vmem [shape: bf16[2,8,32], index: 0, kind: input, shape index: {}]   ;;  %s1862_s1 = inlined_call_operand.vmem [shape: bf16[2,8,32], index: 1, kind: input, shape index: {}]   ;;  %s1863_s2 = inlined_call_operand.vmem [shape: bf16[2,8,32], index: 2, kind: input, shape index: {}]   ;;  %s1864_s3 = inlined_call_operand.vmem [shape: bf16[32,32], index: 3, kind: input, shape index: {}]   ;;  %s1865_s4 = inlined_call_operand.vmem [shape: f32[1,32], index: 4, kind: input, shape index: {}]   ;;  %s1866_s5 = inlined_call_operand.vmem [shape: f32[2,8,32], index: 5, kind: input, shape index: {}]   ;;  %s1867_s6 = inlined_call_operand.vmem [shape: f32[1,32], index: 6, kind: input, shape index: {}]   ;;  %s1868_s7 = inlined_call_operand.vmem [shape: f32[1,32], index: 7, kind: input, shape index: {}]   ;;  %s1869_s8 = inlined_call_operand.vmem [shape: f32[2,8,32], index: 8, kind: output, shape index: {}]  }
   0x1   :  { %s1652_s29 = smov 0  }
   0x2 LB: > { %s37_s30 = sadd.s32 1, %s1590_s28  ;;  %p1389_p0 = scmp.ge.s32.totalorder %s1594_s29, 1  ;;  %s1594_s29 = sphi %s1652_s29, %s18_s29   ;;  %s1590_s28 = sphi %s1650_s28, %s1871_s28   ;;  %s1586_s27 = sphi %s1648_s27, %s1870_s27  }
   0x3   : > { %p39_p1 = scmp.ge.s32.totalorder %s37_s30, 2  ;;  %p329_p2 = scmp.lt.s32.totalorder %s1594_s29, 3 }
   0x5   : > { %s1873_s30 = smov (%p39_p1, %s37_s30), 0  ;;  %p330_p3 = pnand %p1389_p0, %p329_p2 }
   0x6   : > { %p388_p4 = scmp.lt.s32.totalorder (!%p330_p3), %s1586_s27, 1  ;;  %vm437_vm0 = vcmask (!%p330_p3), 64512   ;;  %v1596_v0 = vmov (!%p330_p3), 0.0   ;;  %vm1597_vm1 = vmmov (!%p330_p3), 0   ;;  %vm428_vm2 = vcmask (!%p330_p3), 7168   ;;  %s1600_s16 = smov (!%p330_p3), 120  }
   0x7   : > { %333 = sbr.rel (%p330_p3) target bundleno = 1880 (0x758), region = 52  ;;  %1439 = vmatprep.subr.bf16.mxu0 (!%p330_p3), %v1596_v0  ;;  %438 = vst.msk [vmem:[#allocation4] sm:$0xff] (!%p330_p3), %vm437_vm0, %v1596_v0  ;;  %439 = vst.msk [vmem:[#allocation4 + $0x8] sm:$0xff] (!%p330_p3), %vm437_vm0, %v1596_v0  ;;  %1441 = vmatprep.mubr.msk.bf16.mxu0 (!%p330_p3), %vm1597_vm1, %v1596_v0  ;;  %v1598_v4 = vmov (!%p330_p3), -inf   ;;  %v1599_v10 = vmov (!%p330_p3), 0   ;;  %s1601_s17 = smov (!%p330_p3), 112  }
   0x8   : > { %440 = vst.msk [vmem:[#allocation4 + $0x10] sm:$0xff] (!%p330_p3), %vm437_vm0, %v1596_v0  ;;  %441 = vst.msk [vmem:[#allocation4 + $0x18] sm:$0xff] (!%p330_p3), %vm437_vm0, %v1596_v0  ;;  %1445 = vmatprep.subr.bf16.mxu1 (!%p330_p3), %v1596_v0  ;;  %1447 = vmatprep.mubr.msk.bf16.mxu1 (!%p330_p3), %vm1597_vm1, %v1596_v0  ;;  %s1602_s18 = smov (!%p330_p3), 104   ;;  %vm527_vm3 = vcmask (!%p330_p3), 1043456   ;;  %vm1231_vm4 = vcmask (!%p330_p3), 261120  }
   0x9   : > { %429 = vst.msk [vmem:[#allocation2] sm:$0xff] (!%p330_p3), %vm428_vm2, %v1598_v4  ;;  %430 = vst.msk [vmem:[#allocation2 + $0x8] sm:$0xff] (!%p330_p3), %vm428_vm2, %v1598_v4  ;;  %1542 = vset.pattern.permute.xlu0 (!%p330_p3), %v1599_v10  ;;  %1543 = vset.pattern.permute.xlu1 (!%p330_p3), %v1599_v10 }
   0xa   : > { %431 = vst.msk [vmem:[#allocation2 + $0x10] sm:$0xff] (!%p330_p3), %vm428_vm2, %v1598_v4  ;;  %432 = vst.msk [vmem:[#allocation2 + $0x18] sm:$0xff] (!%p330_p3), %vm428_vm2, %v1598_v4 }
   0xb   : > { %433 = vst.msk [vmem:[#allocation3] sm:$0xff] (!%p330_p3), %vm428_vm2, %v1596_v0  ;;  %434 = vst.msk [vmem:[#allocation3 + $0x8] sm:$0xff] (!%p330_p3), %vm428_vm2, %v1596_v0 }
   0xc   : > { %435 = vst.msk [vmem:[#allocation3 + $0x10] sm:$0xff] (!%p330_p3), %vm428_vm2, %v1596_v0  ;;  %436 = vst.msk [vmem:[#allocation3 + $0x18] sm:$0xff] (!%p330_p3), %vm428_vm2, %v1596_v0 }
   0xe   : > { %s1875_s27 = smov (!%p388_p4, %s1586_s27), 1 }
   0xf   : > { %s1683_s9 = sshll.u32 %s1875_s27, 2 }
  0x10   : > { %s401_s12 = scalar_lea.vmem %s1862_s1, %s1683_s9  ;;  %s394_s15 = scalar_lea.vmem %s1861_s0, %s1683_s9  ;;  %v1717_v13 = vld [vmem:[#allocation2] sm:$0xff]  ;;  %v631_v52 = vld [vmem:[#allocation2 + $0x8] sm:$0xff] }
  0x11   : > { %v443_v1 = vld [vmem:[%s401_s12] sm:$0xf]  ;;  %s408_s21 = scalar_lea.vmem %s1863_s2, %s1683_s9  ;;  %v769_v56 = vld [vmem:[#allocation2 + $0x10] sm:$0xff]  ;;  %v904_v60 = vld [vmem:[#allocation2 + $0x18] sm:$0xff]  ;;  %s1393_s12 = sshll.u32 %s1875_s27, 3 }
  0x12   : > { %v450_v2 = vsel %vm437_vm0, %v443_v1, 0  ;;  %v442_v3 = vld [vmem:[%s394_s15] sm:$0xf]  ;;  %v1398_v11 = vcombine.low %v443_v1, %v443_v1  ;;  %s415_s15 = scalar_lea.vmem %s1866_s5, %s1393_s12  ;;  %s422_s24 = scalar_lea.vmem %s1869_s8, %s1393_s12 }
  0x13   : > { %1440 = vmatpush3.bf16.xpose.msra.mxu0 %v450_v2  ;;  %v1397_v12 = vcombine.low %v442_v3, %v442_v3  ;;  %v1731_v17 = vld [vmem:[%s408_s21] sm:$0xf] }
  0x14   : > { %1457 = vmatprep.subr.bf16.mxu0 %v1596_v0  ;;  %582 = vrot.lane.b32.xlu1 %v1398_v11, %s1600_s16  ;;  %v529_v18 = vsel %vm527_vm3, %v1731_v17, 0  ;;  %v1400_v63 = vcombine.low %v1731_v17, %v1731_v17 }
  0x15   : > { %1446 = vmatpush3.bf16.msra.mxu1 %v529_v18 }
  0x16   : > { %1451 = vmatprep.subr.bf16.mxu1 %v1596_v0 }
  0x18   : > { %577 = vrot.lane.b32.xlu1 %v1397_v12, %s1600_s16 }
  0x1a   : > { %1442 = vmatmul.mubr.msk.bf16.vlgmr.msra.gmra.mrb[0].mxu0 %vm437_vm0, %v442_v3 }
  0x1b   : > { %1459 = vmatprep.mubr.msk.bf16.mxu0 %vm1597_vm1, %v1596_v0 }
  0x1c   : > { %720 = vrot.lane.b32.xlu1 %v1398_v11, %s1601_s17 }
  0x20   : > { %718 = vrot.lane.b32.xlu1 %v1397_v12, %s1601_s17 }
  0x24   : > { %855 = vrot.lane.b32.xlu1 %v1398_v11, %s1602_s18 }
  0x28   : > { %853 = vrot.lane.b32.xlu1 %v1397_v12, %s1602_s18 }
  0x86   : > { %v583_v22 = vpop.permute.xlu1 %582 }
  0x87   : > { %v588_v25 = vsel %vm437_vm0, %v583_v22, 0 }
  0x8a   : > { %v578_v23 = vpop.permute.xlu1 %577 }
  0x8e   : > { %v721_v27 = vpop.permute.xlu1 %720 }
  0x8f   : > { %v726_v29 = vsel %vm437_vm0, %v721_v27, 0 }
  0x92   : > { %v719_v28 = vpop.permute.xlu1 %718 }
  0x96   : > { %v856_v30 = vpop.permute.xlu1 %855 }
  0x97   : > { %v861_v31 = vsel %vm437_vm0, %v856_v30, 0 }
  0x9a   : > { %v854_v32 = vpop.permute.xlu1 %853 }
  0xed   : > { %v486_v5 = vpop.f32.mrb[0].mxu0 }
  0xee   : > { %v1443_v6 = vpop.f32.mrb[1].mxu0  ;;  %v493_v7 = vsel %vm437_vm0, %v486_v5, -inf }
  0xef   : > { %494 = vmax.xlane.f32.xlu0 %v493_v7  ;;  %v489_v8 = vpop.f32.mrb[2].mxu0 }
  0xf0   : > { %v1444_v9 = vpop.f32.mrb[3].mxu0 }
 0x17c   : > { %v495_v14 = vpop.xlane.xlu0 %494 }
 0x17d   : > { %v1720_v15 = vmax.f32 %v1717_v13, %v495_v14 }
 0x17f   : > { %v497_v16 = vsub.f32 %v1717_v13, %v1720_v15  ;;  %573 = vst.msk [vmem:[#allocation2] sm:$0xff] %vm428_vm2, %v1720_v15  ;;  %502 = vperm.xlu0 %1542, %v1720_v15  }
 0x181   : > { %v498_v30 = vmul.f32 1.442695, %v497_v16 }
 0x1fe   : > { %v503_v19 = vpop.permute.xlu0 %502 }
 0x1ff   : > { %v505_v20 = vsub.f32 %v486_v5, %v503_v19 }
 0x201   : > { %v506_v21 = vmul.f32 1.442695, %v505_v20 }
 0x203   : > { %1546 = vpow2.f32 %v506_v21 }
 0x20d   : > { %v1736_v24 = vpop.eup %1546 }
 0x20e   : > { %v523_v26 = vpack.c.bf16 %v1736_v24, %v1736_v24  ;;  %v510_v2 = vsel %vm437_vm0, %v1736_v24, 0.0 }
 0x210   : > { %1448 = vmatmul.mubr.msk.bf16.vlgmr.msra.gmra.mrb[0].mxu1 %vm437_vm0, %v523_v26 }
 0x211   : > { %1452 = vmatpush3.bf16.xpose.msra.mxu1 %v588_v25  ;;  %1453 = vmatprep.mubr.msk.bf16.mxu1 %vm1597_vm1, %v1596_v0 }
 0x212   : > { %1463 = vmatprep.subr.bf16.mxu1 %v1596_v0 }
 0x218   : > { %1454 = vmatmul.mubr.msk.bf16.vlgmr.msra.gmra.mrb[4].mxu1 %vm437_vm0, %v578_v23 }
 0x219   : > { %1464 = vmatpush3.bf16.xpose.msra.mxu1 %v726_v29  ;;  %1465 = vmatprep.mubr.msk.bf16.mxu1 %vm1597_vm1, %v1596_v0 }
 0x21a   : > { %1475 = vmatprep.subr.bf16.mxu1 %v1596_v0 }
 0x220   : > { %1466 = vmatmul.mubr.msk.bf16.vlgmr.msra.gmra.mrb[8].mxu1 %vm437_vm0, %v719_v28 }
 0x221   : > { %1476 = vmatpush3.bf16.xpose.msra.mxu1 %v861_v31  ;;  %1477 = vmatprep.mubr.msk.bf16.mxu1 %vm1597_vm1, %v1596_v0 }
 0x222   : > { %1487 = vmatprep.subr.bf16.mxu1 %v1596_v0 }
 0x228   : > { %1478 = vmatmul.mubr.msk.bf16.vlgmr.msra.gmra.mrb[12].mxu1 %vm437_vm0, %v854_v32 }
 0x229   : > { %1489 = vmatprep.mubr.msk.bf16.mxu1 %vm1597_vm1, %v1596_v0 }
 0x2e3   : > { %v1758_v33 = vpop.f32.mrb[0].mxu1 }
 0x2e4   : > { %v1449_v34 = vpop.f32.mrb[1].mxu1 }
 0x2e5   : > { %v568_v35 = vpop.f32.mrb[2].mxu1 }
 0x2e6   : > { %v1450_v36 = vpop.f32.mrb[3].mxu1 }
 0x2eb   : > { %v624_v37 = vpop.f32.mrb[4].mxu1 }
 0x2ec   : > { %v1455_v38 = vpop.f32.mrb[5].mxu1  ;;  %v632_v39 = vsel %vm437_vm0, %v624_v37, -inf }
 0x2ed   : > { %633 = vmax.xlane.f32.xlu1 %v632_v39  ;;  %v627_v40 = vpop.f32.mrb[6].mxu1 }
 0x2ee   : > { %v1456_v41 = vpop.f32.mrb[7].mxu1 }
 0x2f3   : > { %v762_v42 = vpop.f32.mrb[8].mxu1 }
 0x2f4   : > { %v1467_v43 = vpop.f32.mrb[9].mxu1  ;;  %v770_v44 = vsel %vm437_vm0, %v762_v42, -inf }
 0x2f5   : > { %771 = vmax.xlane.f32.xlu0 %v770_v44  ;;  %v765_v45 = vpop.f32.mrb[10].mxu1  ;;  %v648_v44 = vld [vmem:[#allocation3 + $0x8] sm:$0xff] }
 0x2f6   : > { %v1468_v46 = vpop.f32.mrb[11].mxu1 }
 0x2fb   : > { %v897_v47 = vpop.f32.mrb[12].mxu1 }
 0x2fc   : > { %v1479_v48 = vpop.f32.mrb[13].mxu1  ;;  %v905_v49 = vsel %vm437_vm0, %v897_v47, -inf }
 0x2fd   : > { %906 = vmax.xlane.f32.xlu1 %v905_v49  ;;  %v900_v50 = vpop.f32.mrb[14].mxu1  ;;  %v786_v48 = vld [vmem:[#allocation3 + $0x10] sm:$0xff] }
 0x2fe   : > { %v1480_v51 = vpop.f32.mrb[15].mxu1 }
 0x37a   : > { %v634_v53 = vpop.xlane.xlu1 %633 }
 0x37b   : > { %v635_v54 = vmax.f32 %v631_v52, %v634_v53  ;;  %v921_v53 = vld [vmem:[#allocation3 + $0x18] sm:$0xff] }
 0x37d   : > { %v636_v55 = vsub.f32 %v631_v52, %v635_v54  ;;  %717 = vst.msk [vmem:[#allocation2 + $0x8] sm:$0xff] %vm428_vm2, %v635_v54  ;;  %641 = vperm.xlu1 %1543, %v635_v54  }
 0x37f   : > { %v637_v28 = vmul.f32 1.442695, %v636_v55 }
 0x382   : > { %v772_v57 = vpop.xlane.xlu0 %771 }
 0x383   : > { %v773_v58 = vmax.f32 %v769_v56, %v772_v57  ;;  %v516_v57 = vld [vmem:[#allocation4] sm:$0xff] }
 0x385   : > { %v774_v59 = vsub.f32 %v769_v56, %v773_v58  ;;  %852 = vst.msk [vmem:[#allocation2 + $0x10] sm:$0xff] %vm428_vm2, %v773_v58  ;;  %779 = vperm.xlu0 %1542, %v773_v58  }
 0x387   : > { %v775_v32 = vmul.f32 1.442695, %v774_v59 }
 0x38a   : > { %v907_v61 = vpop.xlane.xlu1 %906 }
 0x38b   : > { %v908_v62 = vmax.f32 %v904_v60, %v907_v61 }
 0x38d   : > { %v909_v1 = vsub.f32 %v904_v60, %v908_v62  ;;  %987 = vst.msk [vmem:[#allocation2 + $0x18] sm:$0xff] %vm428_vm2, %v908_v62  ;;  %914 = vperm.xlu1 %1543, %v908_v62   ;;  %v1012_v62 = vld [vmem:[%s1864_s3 + $0x4] sm:$0xf] }
 0x38f   : > { %v910_v31 = vmul.f32 1.442695, %v909_v1 }
 0x391   : > { %667 = vrot.lane.b32.xlu1 %v1400_v63, %s1600_s16 }
 0x395   : > { %802 = vrot.lane.b32.xlu1 %v1400_v63, %s1601_s17 }
 0x399   : > { %937 = vrot.lane.b32.xlu1 %v1400_v63, %s1602_s18  ;;  %v1017_v63 = vsel %vm527_vm3, %v1012_v62, 0 }
 0x39a   : > { %1488 = vmatpush3.bf16.msra.mxu1 %v1017_v63  ;;  %v1221_v63 = vld [vmem:[%s415_s15] sm:$0xff] }
 0x39b   : > { %1499 = vmatprep.subr.bf16.mxu1 %v1596_v0 }
 0x3a4   : > { %511 = vadd.xlane.f32.xlu0 %v510_v2 }
 0x3fc   : > { %v642_v3 = vpop.permute.xlu1 %641 }
 0x3fd   : > { %v644_v4 = vsub.f32 %v624_v37, %v642_v3  ;;  %v508_v37 = vld [vmem:[#allocation3] sm:$0xff] }
 0x3ff   : > { %v645_v5 = vmul.f32 1.442695, %v644_v4 }
 0x401   : > { %1548 = vpow2.f32 %v645_v5 }
 0x404   : > { %v780_v6 = vpop.permute.xlu0 %779 }
 0x405   : > { %v782_v7 = vsub.f32 %v762_v42, %v780_v6  ;;  %v1001_v42 = vld [vmem:[%s1864_s3] sm:$0xf] }
 0x406   : > { %v1063_v43 = vsel %vm527_vm3, %v1001_v42, 0 }
 0x407   : > { %v783_v8 = vmul.f32 1.442695, %v782_v7 }
 0x409   : > { %1550 = vpow2.f32 %v783_v8 }
 0x40b   : > { %v1549_v9 = vpop.eup %1548 }
 0x40c   : > { %v915_v10 = vpop.permute.xlu1 %914  ;;  %v650_v11 = vsel %vm437_vm0, %v1549_v9, 0.0  ;;  %v663_v20 = vpack.c.bf16 %v1549_v9, %v1549_v9  ;;  %v1173_v9 = vld [vmem:[%s1864_s3 + $0xc] sm:$0xf] }
 0x40d   : > { %v917_v12 = vsub.f32 %v897_v47, %v915_v10  ;;  %651 = vadd.xlane.f32.xlu1 %v650_v11  ;;  %v1178_v11 = vsel %vm527_vm3, %v1173_v9, 0 }
 0x40f   : > { %v918_v14 = vmul.f32 1.442695, %v917_v12  ;;  %v656_v12 = vld [vmem:[#allocation4 + $0x8] sm:$0xff] }
 0x410   : > { %v668_v17 = vpop.permute.xlu1 %667 }
 0x411   : > { %1552 = vpow2.f32 %v918_v14  ;;  %v673_v18 = vsel %vm527_vm3, %v668_v17, 0 }
 0x412   : > { %1458 = vmatpush3.bf16.msra.mxu0 %v673_v18  ;;  %1554 = vpow2.f32 %v637_v28 }
 0x413   : > { %v1551_v19 = vpop.eup %1550  ;;  %1469 = vmatprep.subr.bf16.mxu0 %v1596_v0  ;;  %1556 = vpow2.f32 %v498_v30  ;;  %v929_v30 = vld [vmem:[#allocation4 + $0x18] sm:$0xff] }
 0x414   : > { %v788_v21 = vsel %vm437_vm0, %v1551_v19, 0.0  ;;  %v803_v22 = vpop.permute.xlu1 %802  ;;  %v801_v26 = vpack.c.bf16 %v1551_v19, %v1551_v19  ;;  %1558 = vpow2.f32 %v910_v31 }
 0x415   : > { %1460 = vmatmul.mubr.msk.bf16.vlgmr.msra.gmra.mrb[4].mxu0 %vm437_vm0, %v663_v20  ;;  %789 = vadd.xlane.f32.xlu0 %v788_v21  ;;  %v808_v23 = vsel %vm527_vm3, %v803_v22, 0  ;;  %1560 = vpow2.f32 %v775_v32  ;;  %v794_v22 = vld [vmem:[#allocation4 + $0x10] sm:$0xff] }
 0x416   : > { %1470 = vmatpush3.bf16.msra.mxu0 %v808_v23  ;;  %1471 = vmatprep.mubr.msk.bf16.mxu0 %vm1597_vm1, %v1596_v0 }
 0x417   : > { %1481 = vmatprep.subr.bf16.mxu0 %v1596_v0 }
 0x418   : > { %v938_v24 = vpop.permute.xlu1 %937 }
 0x419   : > { %v943_v27 = vsel %vm527_vm3, %v938_v24, 0 }
 0x41b   : > { %v1553_v25 = vpop.eup %1552 }
 0x41c   : > { %v923_v29 = vsel %vm437_vm0, %v1553_v25, 0.0  ;;  %v936_v34 = vpack.c.bf16 %v1553_v25, %v1553_v25  ;;  %v1555_v35 = vpop.eup %1554 }
 0x41d   : > { %924 = vadd.xlane.f32.xlu1 %v923_v29  ;;  %1472 = vmatmul.mubr.msk.bf16.vlgmr.msra.gmra.mrb[8].mxu0 %vm437_vm0, %v801_v26  ;;  %v1557_v36 = vpop.eup %1556  ;;  %v649_v45 = vmul.f32 %v1555_v35, %v648_v44 }
 0x41e   : > { %1482 = vmatpush3.bf16.msra.mxu0 %v943_v27  ;;  %1483 = vmatprep.mubr.msk.bf16.mxu0 %vm1597_vm1, %v1596_v0  ;;  %v1559_v13 = vpop.eup %1558  ;;  %v509_v15 = vmul.f32 %v1557_v36, %v508_v37 }
 0x41f   : > { %1493 = vmatprep.subr.bf16.mxu0 %v1596_v0  ;;  %v1561_v16 = vpop.eup %1560  ;;  %v922_v54 = vmul.f32 %v1559_v13, %v921_v53 }
 0x420   : > { %v787_v49 = vmul.f32 %v1561_v16, %v786_v48 }
 0x425   : > { %1484 = vmatmul.mubr.msk.bf16.vlgmr.msra.gmra.mrb[12].mxu0 %vm437_vm0, %v936_v34 }
 0x426   : > { %1495 = vmatprep.mubr.msk.bf16.mxu0 %vm1597_vm1, %v1596_v0  ;;  %1494 = vmatpush3.bf16.msra.mxu0 %v1063_v43 }
 0x427   : > { %1505 = vmatprep.subr.bf16.mxu0 %v1596_v0 }
 0x42b   : > { %659 = vperm.xlu0 %1542, %v1555_v35  }
 0x42e   : > { %519 = vperm.xlu1 %1543, %v1557_v36  }
 0x42f   : > { %932 = vperm.xlu0 %1542, %v1559_v13  }
 0x431   : > { %v512_v38 = vpop.xlane.xlu0 %511 }
 0x432   : > { %v513_v39 = vadd.f32 %v512_v38, %v509_v15  ;;  %797 = vperm.xlu1 %1543, %v1561_v16   ;;  %v1115_v16 = vld [vmem:[%s1864_s3 + $0x8] sm:$0xf] }
 0x434   : > { %515 = vst.msk [vmem:[#allocation3] sm:$0xff] %vm428_vm2, %v513_v39 }
 0x43b   : > { %v991_v40 = vld [vmem:[#allocation3] sm:$0xff] }
 0x43c   : > { %1562 = vrcp.f32 %v991_v40  ;;  %v1120_v40 = vsel %vm527_vm3, %v1115_v16, 0 }
 0x446   : > { %v1563_v41 = vpop.eup %1562 }
 0x447   : > { %996 = vperm.xlu0 %1542, %v1563_v41  }
 0x49a   : > { %v652_v46 = vpop.xlane.xlu1 %651 }
 0x49b   : > { %v653_v47 = vadd.f32 %v652_v46, %v649_v45 }
 0x49d   : > { %654 = vst.msk [vmem:[#allocation3 + $0x8] sm:$0xff] %vm428_vm2, %v653_v47 }
 0x4a2   : > { %v790_v50 = vpop.xlane.xlu0 %789 }
 0x4a3   : > { %v791_v51 = vadd.f32 %v790_v50, %v787_v49 }
 0x4a4   : > { %v1002_v52 = vld [vmem:[#allocation3 + $0x8] sm:$0xff] }
 0x4a5   : > { %792 = vst.msk [vmem:[#allocation3 + $0x10] sm:$0xff] %vm428_vm2, %v791_v51  ;;  %1564 = vrcp.f32 %v1002_v52 }
 0x4aa   : > { %v925_v55 = vpop.xlane.xlu1 %924  ;;  %v660_v4 = vpop.permute.xlu0 %659 }
 0x4ab   : > { %v926_v56 = vadd.f32 %v925_v55, %v922_v54  ;;  %v662_v14 = vmul.f32 %v660_v4, %v656_v12  ;;  %v1410_v4 = vld [vmem:[%s1865_s4] ss:$0 sm:$0xff] }
 0x4ac   : > { %v1105_v58 = vld [vmem:[#allocation3 + $0x10] sm:$0xff] }
 0x4ad   : > { %927 = vst.msk [vmem:[#allocation3 + $0x18] sm:$0xff] %vm428_vm2, %v926_v56  ;;  %1566 = vrcp.f32 %v1105_v58 }
 0x4ae   : > { %v520_v59 = vpop.permute.xlu1 %519  ;;  %v933_v6 = vpop.permute.xlu0 %932 }
 0x4af   : > { %v1565_v60 = vpop.eup %1564  ;;  %v522_v61 = vmul.f32 %v520_v59, %v516_v57  ;;  %v935_v31 = vmul.f32 %v933_v6, %v929_v30 }
 0x4b0   : > { %1007 = vperm.xlu1 %1543, %v1565_v60  }
 0x4b1   : > { %v571_v1 = vadd.f32 %v1758_v33, %v522_v61 }
 0x4b2   : > { %v798_v23 = vpop.permute.xlu1 %797 }
 0x4b3   : > { %572 = vst.msk [vmem:[#allocation4] sm:$0xff] %vm437_vm0, %v571_v1  ;;  %v800_v24 = vmul.f32 %v798_v23, %v794_v22  ;;  %v1412_v22 = vld [vmem:[%s1868_s7] ss:$0 sm:$0xff] }
 0x4b4   : > { %v1163_v2 = vld [vmem:[#allocation3 + $0x18] sm:$0xff] }
 0x4b5   : > { %1568 = vrcp.f32 %v1163_v2 }
 0x4b7   : > { %v1567_v3 = vpop.eup %1566 }
 0x4b8   : > { %1110 = vperm.xlu1 %1543, %v1567_v3  }
 0x4ba   : > { %v993_v7 = vld [vmem:[#allocation4] sm:$0xff] }
 0x4bf   : > { %v1569_v5 = vpop.eup %1568 }
 0x4c0   : > { %1168 = vperm.xlu0 %1542, %v1569_v5  }
 0x4c6   : > { %v997_v8 = vpop.permute.xlu0 %996 }
 0x4c7   : > { %v999_v33 = vmul.f32 %v997_v8, %v993_v7 }
 0x4c9   : > { %v1000_v10 = vpack.c.bf16 %v999_v33, %v999_v33 }
 0x4cb   : > { %1496 = vmatmul.mubr.msk.bf16.vlgmr.msra.gmra.mrb[16].mxu0 %vm437_vm0, %v1000_v10 }
 0x4cc   : > { %1506 = vmatpush3.bf16.msra.mxu0 %v1178_v11  ;;  %1507 = vmatprep.mubr.msk.bf16.mxu0 %vm1597_vm1, %v1596_v0 }
 0x4e8   : > { %v709_v17 = vpop.f32.mrb[4].mxu0 }
 0x4e9   : > { %v715_v18 = vadd.f32 %v709_v17, %v662_v14  ;;  %v1461_v19 = vpop.f32.mrb[5].mxu0 }
 0x4ea   : > { %v712_v20 = vpop.f32.mrb[6].mxu0 }
 0x4eb   : > { %716 = vst.msk [vmem:[#allocation4 + $0x8] sm:$0xff] %vm437_vm0, %v715_v18  ;;  %v1462_v21 = vpop.f32.mrb[7].mxu0  ;;  %v1411_v20 = vld [vmem:[%s1867_s6] ss:$0 sm:$0xff] }
 0x4f0   : > { %v844_v25 = vpop.f32.mrb[8].mxu0 }
 0x4f1   : > { %v850_v26 = vadd.f32 %v844_v25, %v800_v24  ;;  %v1473_v27 = vpop.f32.mrb[9].mxu0 }
 0x4f2   : > { %v847_v28 = vpop.f32.mrb[10].mxu0  ;;  %v1004_v15 = vld [vmem:[#allocation4 + $0x8] sm:$0xff] }
 0x4f3   : > { %851 = vst.msk [vmem:[#allocation4 + $0x10] sm:$0xff] %vm437_vm0, %v850_v26  ;;  %v1474_v29 = vpop.f32.mrb[11].mxu0 }
 0x4f8   : > { %v979_v32 = vpop.f32.mrb[12].mxu0 }
 0x4f9   : > { %v985_v34 = vadd.f32 %v979_v32, %v935_v31  ;;  %v1485_v35 = vpop.f32.mrb[13].mxu0 }
 0x4fa   : > { %v982_v36 = vpop.f32.mrb[14].mxu0  ;;  %v1107_v42 = vld [vmem:[#allocation4 + $0x10] sm:$0xff] }
 0x4fb   : > { %986 = vst.msk [vmem:[#allocation4 + $0x18] sm:$0xff] %vm437_vm0, %v985_v34  ;;  %v1486_v37 = vpop.f32.mrb[15].mxu0 }
 0x502   : > { %v1165_v46 = vld [vmem:[#allocation4 + $0x18] sm:$0xff] }
 0x52f   : > { %v1008_v13 = vpop.permute.xlu1 %1007 }
 0x530   : > { %v1010_v38 = vmul.f32 %v1008_v13, %v1004_v15 }
 0x532   : > { %v1011_v39 = vpack.c.bf16 %v1010_v38, %v1010_v38 }
 0x534   : > { %1490 = vmatmul.mubr.msk.bf16.vlgmr.msra.gmra.mrb[16].mxu1 %vm437_vm0, %v1011_v39 }
 0x535   : > { %1500 = vmatpush3.bf16.msra.mxu1 %v1120_v40  ;;  %1501 = vmatprep.mubr.msk.bf16.mxu1 %vm1597_vm1, %v1596_v0 }
 0x537   : > { %v1111_v41 = vpop.permute.xlu1 %1110 }
 0x538   : > { %v1113_v43 = vmul.f32 %v1111_v41, %v1107_v42 }
 0x53a   : > { %v1114_v44 = vpack.c.bf16 %v1113_v43, %v1113_v43 }
 0x53c   : > { %1502 = vmatmul.mubr.msk.bf16.vlgmr.msra.gmra.mrb[20].mxu1 %vm437_vm0, %v1114_v44 }
 0x53f   : > { %v1169_v45 = vpop.permute.xlu0 %1168 }
 0x540   : > { %v1171_v47 = vmul.f32 %v1169_v45, %v1165_v46 }
 0x542   : > { %v1172_v48 = vpack.c.bf16 %v1171_v47, %v1171_v47 }
 0x544   : > { %1508 = vmatmul.mubr.msk.bf16.vlgmr.msra.gmra.mrb[20].mxu0 %vm437_vm0, %v1172_v48 }
 0x59e   : > { %v1099_v49 = vpop.f32.mrb[16].mxu0 }
 0x59f   : > { %v1497_v50 = vpop.f32.mrb[17].mxu0 }
 0x5a0   : > { %v1102_v51 = vpop.f32.mrb[18].mxu0 }
 0x5a1   : > { %v1498_v52 = vpop.f32.mrb[19].mxu0 }
 0x607   : > { %v1053_v53 = vpop.f32.mrb[16].mxu1 }
 0x608   : > { %v1100_v0 = vadd.f32 %v1099_v49, %v1053_v53  ;;  %v1491_v54 = vpop.f32.mrb[17].mxu1 }
 0x609   : > { %v1056_v55 = vpop.f32.mrb[18].mxu1 }
 0x60a   : > { %v1492_v56 = vpop.f32.mrb[19].mxu1 }
 0x60f   : > { %v1156_v57 = vpop.f32.mrb[20].mxu1 }
 0x610   : > { %v1162_v58 = vadd.f32 %v1156_v57, %v1100_v0  ;;  %v1503_v59 = vpop.f32.mrb[21].mxu1 }
 0x611   : > { %v1159_v60 = vpop.f32.mrb[22].mxu1 }
 0x612   : > { %v1504_v61 = vpop.f32.mrb[23].mxu1 }
 0x617   : > { %v1214_v62 = vpop.f32.mrb[20].mxu0 }
 0x618   : > { %v1220_v1 = vadd.f32 %v1214_v62, %v1162_v58  ;;  %v1509_v2 = vpop.f32.mrb[21].mxu0 }
 0x619   : > { %v1217_v3 = vpop.f32.mrb[22].mxu0 }
 0x61a   : > { %v1222_v5 = vadd.f32 %v1221_v63, %v1220_v1  ;;  %v1510_v6 = vpop.f32.mrb[23].mxu0 }
 0x61c   : > { %v1230_v7 = vadd.f32 %v1410_v4, %v1222_v5 }
 0x61e   : > { %v1232_v8 = vsel %vm1231_vm4, %v1230_v7, 0.0 }
 0x61f   : > { %1233 = vadd.xlane.f32.xlu1 %v1232_v8 }
 0x6ac   : > { %v1234_v9 = vpop.xlane.xlu1 %1233 }
 0x6ad   : > { %v1236_v33 = vmul.f32 0.03125, %v1234_v9 }
 0x6af   : > { %v1237_v10 = vsub.f32 %v1230_v7, %v1236_v33 }
 0x6b1   : > { %v1238_v11 = vmul.f32 %v1237_v10, %v1237_v10 }
 0x6b3   : > { %v1239_v12 = vsel %vm1231_vm4, %v1238_v11, 0.0 }
 0x6b4   : > { %1240 = vadd.xlane.f32.xlu0 %v1239_v12 }
 0x741   : > { %v1241_v14 = vpop.xlane.xlu0 %1240 }
 0x742   : > { %v1242_v17 = vmul.f32 0.03125, %v1241_v14 }
 0x744   : > { %v1243_v18 = vadd.f32 1e-05, %v1242_v17 }
 0x746   : > { %1570 = vrsqrt.f32 %v1243_v18 }
 0x750   : > { %v1571_v19 = vpop.eup %1570 }
 0x751   : > { %v1245_v21 = vmul.f32 %v1571_v19, %v1237_v10 }
 0x753   : > { %v1253_v23 = vmul.f32 %v1411_v20, %v1245_v21 }
 0x755   : > { %v1261_v24 = vadd.f32 %v1412_v22, %v1253_v23 }
 0x757   : > { %1262 = vst.msk [vmem:[%s422_s24] sm:$0xff] %vm1231_vm4, %v1261_v24 }
 0x758 PF: > { %s18_s29 = sadd.s32 1, %s1594_s29   ;;  %s1870_s27 = smov %s1590_s28 }
 0x759   : > { %p15_p5 = scmp.ge.s32.totalorder %s18_s29, 4   ;;  %s1871_s28 = smov %s1873_s30 }
 0x75b   :  { %17 = sbr.rel (!%p15_p5) target bundleno = 2 (0x2), region = 108 }

// kernel: decoder_layer.11
= control target key start
LH: loop header
LB: loop body
LE: loop exit
PB: predicated region body
PF: predicated region fallthrough
CT: control target
= control target key end

     0   :  { %v330_v1 = vmov 0.0   ;;  %vm331_vm0 = vmmov 0   ;;  %vm54_vm1 = vcmask 261120   ;;  %s430_s0 = inlined_call_operand.vmem [shape: f32[16,32], index: 0, kind: input, shape index: {}]   ;;  %s431_s1 = inlined_call_operand.vmem [shape: bf16[32,64], index: 1, kind: input, shape index: {}]   ;;  %s432_s2 = inlined_call_operand.vmem [shape: f32[1,64], index: 2, kind: input, shape index: {}]   ;;  %s433_s3 = inlined_call_operand.vmem [shape: bf16[64,32], index: 3, kind: input, shape index: {}]   ;;  %s434_s4 = inlined_call_operand.vmem [shape: f32[1,32], index: 4, kind: input, shape index: {}]   ;;  %s435_s5 = inlined_call_operand.vmem [shape: f32[1,32], index: 5, kind: input, shape index: {}]   ;;  %s436_s6 = inlined_call_operand.vmem [shape: f32[1,32], index: 6, kind: input, shape index: {}]   ;;  %s437_s7 = inlined_call_operand.hbm [shape: f32[16,32], index: 7, kind: output, shape index: {}]  }
   0x1   :  { %v296_v0 = vld [vmem:[%s431_s1] sm:$0xff]   ;;  %271 = vmatprep.subr.bf16.mxu0 %v330_v1  ;;  %v297_v2 = vld [vmem:[%s431_s1 + $0x8] sm:$0xff]   ;;  %279 = vmatprep.subr.bf16.mxu1 %v330_v1 }
   0x2   :  { %272 = vmatpush3.bf16.msra.mxu0 %v296_v0  ;;  %275 = vmatprep.mubr.msk.bf16.mxu0 %vm331_vm0, %v330_v1  ;;  %v28_v3 = vld [vmem:[%s430_s0] sm:$0xff]  ;;  %v29_v4 = vld [vmem:[%s430_s0 + $0x8] sm:$0xff] }
   0x3   :  { %273 = vmatprep.subr.bf16.mxu0 %v330_v1  ;;  %v298_v5 = vld [vmem:[%s433_s3] sm:$0xff]   ;;  %287 = vmatprep.mubr.msk.bf16.mxu1 %vm331_vm0, %v330_v1  ;;  %v299_v6 = vld [vmem:[%s433_s3 + $0x8] sm:$0xff]   ;;  %v30_v7 = vpack.c.bf16 %v29_v4, %v28_v3 }
   0x4   :  { %280 = vmatpush3.bf16.msra.mxu1 %v298_v5 }
   0x5   :  { %281 = vmatprep.subr.bf16.mxu1 %v330_v1 }
   0x6   :  { %274 = vmatpush3.bf16.msra.mxu0 %v297_v2 }
   0x7   :  { %12 = vsyncpa [#allocation3], 0  ;;  %v300_v8 = vld [vmem:[%s433_s3 + $0x10] sm:$0xff]   ;;  %v301_v9 = vld [vmem:[%s433_s3 + $0x18] sm:$0xff]   ;;  %vm141_vm2 = vcmask 523264   ;;  %s332_s20 = smov [#allocation2]  }
   0x8   :  { %282 = vmatpush3.bf16.msra.mxu1 %v299_v6  ;;  %v251_v10 = vld [vmem:[%s432_s2] ss:$0 sm:$0xff]  ;;  %s240_s21 = sshll.u32 %s332_s20, 4  ;;  %s241_s21 = int_to_ptr.vmem [resolvable:$true] %s240_s21 }
   0x9   :  { %276 = vmatmul.mubr.msk.bf16.vlgmr.msra.gmra.mrb[0].mxu0 %vm54_vm1, %v30_v7  ;;  %283 = vmatprep.subr.bf16.mxu1 %v330_v1  ;;  %v255_v20 = vld [vmem:[%s434_s4] ss:$0 sm:$0xff]  ;;  %s306_s22 = scalar_lea.vmem %s241_s21, 256  ;;  %p311_p1 = scmp.lt.s32.totalorder %s241_s21, %s241_s21 }
   0xa   :  { %v261_v48 = vld [vmem:[%s435_s5] ss:$0 sm:$0xff]  ;;  %p307_p0 = scmp.ne.s32.totalorder %s241_s21, %s306_s22  ;;  %p312_p2 = scmp.lt.s32.totalorder %s306_s22, %s306_s22 }
   0xb   :  { %v262_v50 = vld [vmem:[%s436_s6] ss:$0 sm:$0xff] }
   0xc   :  { %284 = vmatpush3.bf16.msra.mxu1 %v300_v8  ;;  %p313_p3 = por %p312_p2, %p311_p1 }
   0xd   :  { %285 = vmatprep.subr.bf16.mxu1 %v330_v1 }
   0xe   :  { %p314_p4 = pnand %p313_p3, %p307_p0 }
  0x10   :  { %286 = vmatpush3.bf16.msra.mxu1 %v301_v9 }
  0xdc   :  { %v92_v11 = vpop.f32.mrb[0].mxu0 }
  0xdd   :  { %v93_v12 = vadd.f32 %v251_v10, %v92_v11  ;;  %v277_v13 = vpop.f32.mrb[1].mxu0 }
  0xde   :  { %v95_v14 = vpop.f32.mrb[2].mxu0 }
  0xdf   :  { %v96_v15 = vadd.f32 %v251_v10, %v95_v14  ;;  %v278_v16 = vpop.f32.mrb[3].mxu0  ;;  %v99_v17 = vmax.f32 %v93_v12, 0.0 }
  0xe1   :  { %v100_v18 = vmax.f32 %v96_v15, 0.0 }
  0xe3   :  { %v101_v19 = vpack.c.bf16 %v100_v18, %v99_v17 }
  0xe5   :  { %288 = vmatmul.mubr.msk.bf16.vlgmr.msra.gmra.mrb[0].mxu1 %vm141_vm2, %v101_v19 }
 0x1b8   :  { %v179_v21 = vpop.f32.mrb[0].mxu1 }
 0x1b9   :  { %v180_v22 = vadd.f32 %v255_v20, %v179_v21  ;;  %v289_v23 = vpop.f32.mrb[1].mxu1 }
 0x1ba   :  { %v182_v24 = vpop.f32.mrb[2].mxu1 }
 0x1bb   :  { %v183_v25 = vadd.f32 %v255_v20, %v182_v24  ;;  %v290_v26 = vpop.f32.mrb[3].mxu1  ;;  %v186_v27 = vadd.f32 %v180_v22, %v28_v3 }
 0x1bd   :  { %v188_v28 = vsel %vm54_vm1, %v186_v27, 0.0  ;;  %v187_v29 = vadd.f32 %v183_v25, %v29_v4 }
 0x1be   :  { %189 = vadd.xlane.f32.xlu0 %v188_v28 }
 0x1bf   :  { %v191_v30 = vsel %vm54_vm1, %v187_v29, 0.0 }
 0x1c2   :  { %192 = vadd.xlane.f32.xlu0 %v191_v30 }
 0x24b   :  { %v190_v31 = vpop.xlane.xlu0 %189 }
 0x24c   :  { %v195_v32 = vmul.f32 0.03125, %v190_v31 }
 0x24e   :  { %v197_v33 = vsub.f32 %v186_v27, %v195_v32 }
 0x24f   :  { %v193_v34 = vpop.xlane.xlu0 %192 }
 0x250   :  { %v196_v35 = vmul.f32 0.03125, %v193_v34  ;;  %v199_v36 = vmul.f32 %v197_v33, %v197_v33 }
 0x252   :  { %v198_v37 = vsub.f32 %v187_v29, %v196_v35  ;;  %v201_v38 = vsel %vm54_vm1, %v199_v36, 0.0 }
 0x253   :  { %202 = vadd.xlane.f32.xlu1 %v201_v38 }
 0x254   :  { %v200_v39 = vmul.f32 %v198_v37, %v198_v37 }
 0x256   :  { %v204_v40 = vsel %vm54_vm1, %v200_v39, 0.0 }
 0x257   :  { %205 = vadd.xlane.f32.xlu1 %v204_v40 }
 0x2e0   :  { %v203_v41 = vpop.xlane.xlu1 %202 }
 0x2e1   :  { %v207_v42 = vmul.f32 0.03125, %v203_v41 }
 0x2e3   :  { %v209_v43 = vadd.f32 1e-05, %v207_v42 }
 0x2e4   :  { %v206_v44 = vpop.xlane.xlu1 %205 }
 0x2e5   :  { %302 = vrsqrt.f32 %v209_v43  ;;  %v208_v45 = vmul.f32 0.03125, %v206_v44 }
 0x2e7   :  { %v210_v46 = vadd.f32 1e-05, %v208_v45 }
 0x2e9   :  { %304 = vrsqrt.f32 %v210_v46 }
 0x2ef   :  { %v303_v47 = vpop.eup %302 }
 0x2f0   :  { %v213_v49 = vmul.f32 %v303_v47, %v197_v33 }
 0x2f2   :  { %v222_v51 = vmul.f32 %v261_v48, %v213_v49 }
 0x2f3   :  { %v305_v52 = vpop.eup %304 }
 0x2f4   :  { %v214_v53 = vmul.f32 %v305_v52, %v198_v37  ;;  %v231_v54 = vadd.f32 %v262_v50, %v222_v51 }
 0x2f6   :  { %v223_v55 = vmul.f32 %v261_v48, %v214_v53  ;;  %233 = vst.msk [vmem:[#allocation2] sm:$0xff] %vm54_vm1, %v231_v54 }
 0x2f8   :  { %v232_v56 = vadd.f32 %v262_v50, %v223_v55 }
 0x2fa   :  { %234 = vst.msk [vmem:[#allocation2 + $0x8] sm:$0xff] %vm54_vm1, %v232_v56 }
 0x2fb   :  { %317 = shalt.err (!%p314_p4)
}
 0x2fc   :  { %s318_s23 = scalar_lea.hbm %s437_s7, 256 }
 0x2fd   :  { %p319_p5 = scmp.ne.s32.totalorder %s437_s7, %s318_s23  ;;  %p322_p6 = scmp.lt.u32.totalorder %s318_s23, %s437_s7 }
 0x2ff   :  { %p324_p7 = pnand %p322_p6, %p319_p5 }
 0x301   :  { %327 = shalt.err (!%p324_p7)
}
 0x302   :  { %s333_s28 = smov 128   ;;  %s334_s29 = smov 8  }
 0x303   :  { %246 = dma.vmem_to_hbm [thread:$0]  %s241_s21, 256, %s437_s7, [#allocation3], %s333_s28, %s333_s28, %s334_s29  }
 0x304   :  { %328 = dma.done.wait [#allocation3], 256  }
 0x305   :  { %329 = vsyncadd [#allocation3], 4294967040 }
 0x306   :  { %250 = vsyncpa [#allocation3], 1 }

</bundles_post_ra>
